<compile_context>
chip_gen: v7x
topology: tpu7x:2x2x1
jax: 0.10.0
libtpu: 0.0.40
codegen_flags: <defaults>
</compile_context>

<pallas_src>
import functools

import jax
import jax.numpy as jnp
from jax.experimental import pallas as pl
from jax.experimental.pallas import tpu as pltpu


def mha_kernel(q_ref, k_ref, v_ref,
               wq_ref, bq_ref, wk_ref, bk_ref, wv_ref, bv_ref,
               wo_ref, bo_ref, gamma_ref, beta_ref,
               out_ref,
               kp_cache, vp_cache,
               *, h, d_k, d_model, inv_scale, eps):
    cdt = q_ref.dtype                       # native MXU compute dtype (bf16/f32)
    qi = pl.program_id(1)

    # K/V projections are identical for every Q tile of a batch element:
    # compute them once (first Q tile of each batch) and cache them in a
    # persistent VMEM scratch.  Requires the Q grid axis to be "arbitrary".
    @pl.when(qi == 0)
    def _project_kv():
        kp = jnp.dot(k_ref[0], wk_ref[...],
                     preferred_element_type=jnp.float32) + bk_ref[...]
        vp = jnp.dot(v_ref[0], wv_ref[...],
                     preferred_element_type=jnp.float32) + bv_ref[...]
        kp_cache[...] = kp.astype(cdt)
        vp_cache[...] = vp.astype(cdt)

    q_in = q_ref[0]                         # [TQ, d_model] (native dtype)
    tq = q_in.shape[0]

    # Q projection (full-width MXU matmul, f32 accumulation); fold 1/sqrt(d_k)
    # into q once instead of scaling the [TQ, N] score tile per head.
    qp = jnp.dot(q_in, wq_ref[...],
                 preferred_element_type=jnp.float32) + bq_ref[...]
    qh_all = (qp * inv_scale).astype(cdt)   # [TQ, h*d_k]
    kh_all = kp_cache[...]                  # [N,  h*d_k]
    vh_all = vp_cache[...]                  # [N,  h*d_k]

    # Per-head attention.  Each head's [TQ, d_k] output is folded straight
    # into the output projection (lane-dense [TQ, d_model] f32 accumulator):
    # no narrow column-slice scratch stores, no concatenate/relayout.
    out_acc = jnp.zeros((tq, d_model), jnp.float32)
    for hd in range(h):
        sl = slice(hd * d_k, (hd + 1) * d_k)
        qh = qh_all[:, sl]                  # [TQ, d_k]
        kh = kh_all[:, sl]                  # [N,  d_k]
        vh = vh_all[:, sl]                  # [N,  d_k]
        # QK^T without an explicit transpose: contract the shared d_k axis.
        scores = jax.lax.dot_general(
            qh, kh, dimension_numbers=(((1,), (1,)), ((), ())),
            preferred_element_type=jnp.float32)           # [TQ, N], f32
        # Softmax statistics in f32.  Normalise AFTER the PV matmul (the sum
        # is linear): TQ exact divides per head instead of TQ*N multiplies,
        # and no approximate reciprocal (exact parity with the reference).
        m = jnp.max(scores, axis=-1, keepdims=True)
        p = jnp.exp(scores - m)                           # [TQ, N]
        l = jnp.sum(p, axis=-1, keepdims=True)            # [TQ, 1]
        pv = jnp.dot(p.astype(cdt), vh,
                     preferred_element_type=jnp.float32)  # [TQ, d_k]
        attn_h = pv * (1.0 / l)                           # exact normalisation
        # Output projection: this head's slice of Wo, accumulated in f32.
        out_acc = out_acc + jnp.dot(attn_h.astype(cdt), wo_ref[sl, :],
                                    preferred_element_type=jnp.float32)
    # TODO(synk): when d_k is a multiple of 128, a packed [TQ, h*d_k] VMEM
    # scratch + one output-projection matmul is preferable to h accumulations.

    # Output bias, residual (original input query; see module-level TODO) and
    # LayerNorm (eps=1e-5, biased variance), all statistics in f32.
    out = out_acc + bo_ref[...] + q_in.astype(jnp.float32)
    mean = jnp.mean(out, axis=-1, keepdims=True)
    centered = out - mean
    var = jnp.mean(centered * centered, axis=-1, keepdims=True)
    out = centered * jax.lax.rsqrt(var + eps) * gamma_ref[...] + beta_ref[...]

    out_ref[0] = out.astype(out_ref.dtype)


def _device_kind():
    try:
        return jax.devices()[0].device_kind.lower()
    except Exception:
        return ""


def multi_head_attention(q, k, v, params, *, h, q_tile=None,
                         vmem_limit_bytes=None):
    B, Q, d_model = q.shape
    N = k.shape[1]
    assert d_model % h == 0
    d_k = d_model // h
    inv_scale = 1.0 / (float(d_k) ** 0.5)

    kind = _device_kind()
    # Q tile: multiple of 8 sublanes (or the full Q when it doesn't divide).
    # v6e (256-wide MXU rows, 128 MiB VMEM) benefits from 256-row tiles; v5e's
    # MXU is only 128 wide and v7x has just 64 MiB VMEM, so stay at 128 there.
    if q_tile is None:
        if Q <= 128:
            q_tile = Q
        elif "v6" in kind and Q % 256 == 0:
            q_tile = 256
        else:
            q_tile = 128
    if Q % q_tile != 0 or (q_tile != Q and q_tile % 8 != 0):
        # TODO(synk): pad Q instead; q_tile=Q can blow the VMEM budget for huge Q.
        q_tile = Q

    if vmem_limit_bytes is None:
        # v5e/v6e: 128 MiB physical VMEM (the 16/32 MiB scoped default is the
        # limiter, not hardware).  v7x/unknown: stay under 64 MiB physical.
        if ("v5" in kind) or ("v6" in kind):
            vmem_limit_bytes = 100 * 1024 * 1024
        else:
            vmem_limit_bytes = 56 * 1024 * 1024

    wq, bq, wk, bk, wv, bv, wo, bo, gamma, beta = params
    cdt = q.dtype
    # Matmul weights follow the activation dtype (bf16 MXU path); biases and
    # LayerNorm parameters stay f32 for accuracy of the f32 epilogue.
    wq = wq.astype(cdt); wk = wk.astype(cdt); wv = wv.astype(cdt); wo = wo.astype(cdt)
    bq = bq.reshape(1, -1).astype(jnp.float32)
    bk = bk.reshape(1, -1).astype(jnp.float32)
    bv = bv.reshape(1, -1).astype(jnp.float32)
    bo = bo.reshape(1, -1).astype(jnp.float32)
    gamma = gamma.reshape(1, -1).astype(jnp.float32)
    beta = beta.reshape(1, -1).astype(jnp.float32)

    kernel = functools.partial(mha_kernel, h=h, d_k=d_k, d_model=d_model,
                               inv_scale=inv_scale, eps=1e-5)

    act_q_spec = pl.BlockSpec((1, q_tile, d_model), lambda b, qi: (b, qi, 0))
    # K/V block index is constant across the Q axis -> stays resident in VMEM
    # (only re-DMAed when the batch index changes).
    act_kv_spec = pl.BlockSpec((1, N, d_model), lambda b, qi: (b, 0, 0))
    w_spec = lambda shape: pl.BlockSpec(shape, lambda b, qi, _n=len(shape): (0,) * _n)

    itemsize = jnp.dtype(cdt).itemsize
    cost = pl.CostEstimate(
        # 4 projection matmuls + QK^T + PV, per token
        flops=int(2 * B * d_model * (2 * Q * d_model + 2 * N * d_model + 2 * Q * N)),
        transcendentals=int(B * h * Q * N),            # softmax exp
        bytes_accessed=int(itemsize * (2 * B * Q * d_model + 2 * B * N * d_model
                                       + 4 * d_model * d_model)),
    )

    return pl.pallas_call(
        kernel,
        out_shape=jax.ShapeDtypeStruct((B, Q, d_model), q.dtype),
        grid_spec=pltpu.PrefetchScalarGridSpec(
            num_scalar_prefetch=0,
            grid=(B, Q // q_tile),
            in_specs=[
                act_q_spec,            # query (Q-tiled)
                act_kv_spec,           # key   (resident across Q tiles)
                act_kv_spec,           # value (resident across Q tiles)
                w_spec(wq.shape), w_spec(bq.shape),
                w_spec(wk.shape), w_spec(bk.shape),
                w_spec(wv.shape), w_spec(bv.shape),
                w_spec(wo.shape), w_spec(bo.shape),
                w_spec(gamma.shape), w_spec(beta.shape),
            ],
            out_specs=pl.BlockSpec((1, q_tile, d_model), lambda b, qi: (b, qi, 0)),
            # Projected K/V cache: persists across grid steps, refilled at qi==0.
            scratch_shapes=[pltpu.VMEM((N, h * d_k), cdt),
                            pltpu.VMEM((N, h * d_k), cdt)],
        ),
        compiler_params=pltpu.CompilerParams(
            # Batch axis parallel (megacore sharding); Q axis "arbitrary" so
            # the pl.when(qi == 0) K/V-projection cache is legal.
            dimension_semantics=("parallel", "arbitrary"),
            vmem_limit_bytes=vmem_limit_bytes),
        cost_estimate=cost,
    )(q, k, v, wq, bq, wk, bk, wv, bv, wo, bo, gamma, beta)


def mha_reference(q, k, v, params, *, h):
    """Pure-JAX reference (same intended semantics) for correctness checking."""
    B, Q, d_model = q.shape
    N = k.shape[1]
    d_k = d_model // h
    scale = float(d_k) ** 0.5
    wq, bq, wk, bk, wv, bv, wo, bo, gamma, beta = params
    hp = jax.lax.Precision.HIGHEST

    qp = (jnp.dot(q, wq, precision=hp) + bq).reshape(B, Q, h, d_k).transpose(0, 2, 1, 3)
    kp = (jnp.dot(k, wk, precision=hp) + bk).reshape(B, N, h, d_k).transpose(0, 2, 1, 3)
    vp = (jnp.dot(v, wv, precision=hp) + bv).reshape(B, N, h, d_k).transpose(0, 2, 1, 3)
    scores = jnp.einsum("bhqd,bhkd->bhqk", qp, kp, precision=hp) / scale
    p = jax.nn.softmax(scores, axis=-1)
    attn = jnp.einsum("bhqk,bhkd->bhqd", p, vp, precision=hp)
    attn = attn.transpose(0, 2, 1, 3).reshape(B, Q, h * d_k)
    out = jnp.dot(attn, wo, precision=hp) + bo
    out = out + q
    mean = jnp.mean(out, axis=-1, keepdims=True)
    var = jnp.mean((out - mean) ** 2, axis=-1, keepdims=True)
    return (out - mean) / jnp.sqrt(var + 1e-5) * gamma + beta


def init_params(key, d_model, h):
    d_k = d_model // h
    ks = jax.random.split(key, 8)
    s = 1.0 / jnp.sqrt(d_model)
    wq = jax.random.normal(ks[0], (d_model, h * d_k), jnp.float32) * s
    wk = jax.random.normal(ks[1], (d_model, h * d_k), jnp.float32) * s
    wv = jax.random.normal(ks[2], (d_model, h * d_k), jnp.float32) * s
    wo = jax.random.normal(ks[3], (h * d_k, d_model), jnp.float32) * s
    bq = jax.random.normal(ks[4], (h * d_k,), jnp.float32) * 0.01
    bk = jax.random.normal(ks[5], (h * d_k,), jnp.float32) * 0.01
    bv = jax.random.normal(ks[6], (h * d_k,), jnp.float32) * 0.01
    bo = jax.random.normal(ks[7], (d_model,), jnp.float32) * 0.01
    gamma = jnp.ones((d_model,), jnp.float32)
    beta = jnp.zeros((d_model,), jnp.float32)
    return (wq, bq, wk, bk, wv, bv, wo, bo, gamma, beta)


if __name__ == "__main__":
    # Small shapes; Q=16 with q_tile=8 exercises the (B, Q-tile) grid and the
    # qi==0 K/V-projection cache being reused across Q tiles of each batch.
    B, Q, N, d_model, h = 2, 16, 8, 32, 4

    key = jax.random.PRNGKey(0)
    kq, kk, kv, kp = jax.random.split(key, 4)
    q = jax.random.normal(kq, (B, Q, d_model), jnp.float32)
    k = jax.random.normal(kk, (B, N, d_model), jnp.float32)
    v = jax.random.normal(kv, (B, N, d_model), jnp.float32)
    params = init_params(kp, d_model, h)

    out = multi_head_attention(q, k, v, params, h=h, q_tile=8)
    out = jax.block_until_ready(out)

    ref = mha_reference(q, k, v, params, h=h)
    assert out.shape == (B, Q, d_model)
    max_err = float(jnp.max(jnp.abs(out - ref)))
    # Kernel math is exact f32 (no approximate reciprocal); tolerance only
    # covers MXU multi-pass rounding differences on real hardware.
    assert jnp.allclose(out, ref, atol=5e-3, rtol=5e-3), (
        f"mismatch vs reference, max abs err {max_err}")

    print("KERNEL_OK")
</pallas_src>

<mosaic_0001>
module attributes {stable_mosaic.version = 11 : i64} {
  func.func @mha_kernel(%arg0: i32, %arg1: i32, %arg2: memref<1x8x32xf32, #tpu.memory_space<vmem>>, %arg3: memref<1x8x32xf32, #tpu.memory_space<vmem>>, %arg4: memref<1x8x32xf32, #tpu.memory_space<vmem>>, %arg5: memref<32x32xf32, #tpu.memory_space<vmem>>, %arg6: memref<1x32xf32, #tpu.memory_space<vmem>>, %arg7: memref<32x32xf32, #tpu.memory_space<vmem>>, %arg8: memref<1x32xf32, #tpu.memory_space<vmem>>, %arg9: memref<32x32xf32, #tpu.memory_space<vmem>>, %arg10: memref<1x32xf32, #tpu.memory_space<vmem>>, %arg11: memref<32x32xf32, #tpu.memory_space<vmem>>, %arg12: memref<1x32xf32, #tpu.memory_space<vmem>>, %arg13: memref<1x32xf32, #tpu.memory_space<vmem>>, %arg14: memref<1x32xf32, #tpu.memory_space<vmem>>, %arg15: memref<1x8x32xf32, #tpu.memory_space<vmem>>, %arg16: memref<8x32xf32, #tpu.memory_space<vmem>>, %arg17: memref<8x32xf32, #tpu.memory_space<vmem>>) attributes {dimension_semantics = [#tpu.dimension_semantics<parallel>, #tpu.dimension_semantics<arbitrary>], iteration_bounds = array<i64: 2, 2>, scalar_prefetch = 0 : i64, scratch_operands = 2 : i64, tpu.core_type = #tpu.core_type<tc>, window_params = [{transform_indices = @transform_0, window_bounds = array<i64: 1, 8, 32>}, {transform_indices = @transform_1, window_bounds = array<i64: 1, 8, 32>}, {transform_indices = @transform_2, window_bounds = array<i64: 1, 8, 32>}, {pipeline_mode = #tpu.pipeline_mode<synchronous>, transform_indices = @transform_3, window_bounds = array<i64: 32, 32>}, {pipeline_mode = #tpu.pipeline_mode<synchronous>, transform_indices = @transform_4, window_bounds = array<i64: 1, 32>}, {pipeline_mode = #tpu.pipeline_mode<synchronous>, transform_indices = @transform_5, window_bounds = array<i64: 32, 32>}, {pipeline_mode = #tpu.pipeline_mode<synchronous>, transform_indices = @transform_6, window_bounds = array<i64: 1, 32>}, {pipeline_mode = #tpu.pipeline_mode<synchronous>, transform_indices = @transform_7, window_bounds = array<i64: 32, 32>}, {pipeline_mode = #tpu.pipeline_mode<synchronous>, transform_indices = @transform_8, window_bounds = array<i64: 1, 32>}, {pipeline_mode = #tpu.pipeline_mode<synchronous>, transform_indices = @transform_9, window_bounds = array<i64: 32, 32>}, {pipeline_mode = #tpu.pipeline_mode<synchronous>, transform_indices = @transform_10, window_bounds = array<i64: 1, 32>}, {pipeline_mode = #tpu.pipeline_mode<synchronous>, transform_indices = @transform_11, window_bounds = array<i64: 1, 32>}, {pipeline_mode = #tpu.pipeline_mode<synchronous>, transform_indices = @transform_12, window_bounds = array<i64: 1, 32>}, {transform_indices = @transform_13, window_bounds = array<i64: 1, 8, 32>}]} {
    %c0_i32 = arith.constant 0 : i32
    %0 = arith.cmpi eq, %arg1, %c0_i32 : i32
    %1 = arith.extui %0 : i1 to i32
    %c0_i32_0 = arith.constant 0 : i32
    %2 = arith.cmpi ne, %1, %c0_i32_0 : i32
    scf.if %2 {
      %c0_56 = arith.constant 0 : index
      %c0_57 = arith.constant 0 : index
      %c0_58 = arith.constant 0 : index
      %120 = vector.load %arg3[%c0_56, %c0_57, %c0_58] : memref<1x8x32xf32, #tpu.memory_space<vmem>>, vector<1x8x32xf32>
      %121 = vector.shape_cast %120 : vector<1x8x32xf32> to vector<8x32xf32>
      %c0_59 = arith.constant 0 : index
      %c0_60 = arith.constant 0 : index
      %122 = vector.load %arg7[%c0_59, %c0_60] : memref<32x32xf32, #tpu.memory_space<vmem>>, vector<32x32xf32>
      %cst_61 = arith.constant dense<0.000000e+00> : vector<8x32xf32>
      %123 = tpu.matmul %121, %122, %cst_61 {dimension_numbers = #tpu.dot_dimension_numbers<[1], [0], [0], [1], [0, 0, 1, 1], [], []>} : vector<8x32xf32>, vector<32x32xf32>, vector<8x32xf32> -> vector<8x32xf32>
      %c0_62 = arith.constant 0 : index
      %c0_63 = arith.constant 0 : index
      %124 = vector.load %arg8[%c0_62, %c0_63] : memref<1x32xf32, #tpu.memory_space<vmem>>, vector<1x32xf32>
      %125 = vector.broadcast %124 : vector<1x32xf32> to vector<8x32xf32>
      %126 = arith.addf %123, %125 : vector<8x32xf32>
      %c0_64 = arith.constant 0 : index
      %c0_65 = arith.constant 0 : index
      %c0_66 = arith.constant 0 : index
      %127 = vector.load %arg4[%c0_64, %c0_65, %c0_66] : memref<1x8x32xf32, #tpu.memory_space<vmem>>, vector<1x8x32xf32>
      %128 = vector.shape_cast %127 : vector<1x8x32xf32> to vector<8x32xf32>
      %c0_67 = arith.constant 0 : index
      %c0_68 = arith.constant 0 : index
      %129 = vector.load %arg9[%c0_67, %c0_68] : memref<32x32xf32, #tpu.memory_space<vmem>>, vector<32x32xf32>
      %cst_69 = arith.constant dense<0.000000e+00> : vector<8x32xf32>
      %130 = tpu.matmul %128, %129, %cst_69 {dimension_numbers = #tpu.dot_dimension_numbers<[1], [0], [0], [1], [0, 0, 1, 1], [], []>} : vector<8x32xf32>, vector<32x32xf32>, vector<8x32xf32> -> vector<8x32xf32>
      %c0_70 = arith.constant 0 : index
      %c0_71 = arith.constant 0 : index
      %131 = vector.load %arg10[%c0_70, %c0_71] : memref<1x32xf32, #tpu.memory_space<vmem>>, vector<1x32xf32>
      %132 = vector.broadcast %131 : vector<1x32xf32> to vector<8x32xf32>
      %133 = arith.addf %130, %132 : vector<8x32xf32>
      %c0_72 = arith.constant 0 : index
      %c0_73 = arith.constant 0 : index
      %134 = vector.load %arg16[%c0_72, %c0_73] : memref<8x32xf32, #tpu.memory_space<vmem>>, vector<8x32xf32>
      tpu.vector_store %arg16[%c0_72, %c0_73], %126 {strides = array<i32>} : memref<8x32xf32, #tpu.memory_space<vmem>>, vector<8x32xf32>,
      %c0_74 = arith.constant 0 : index
      %c0_75 = arith.constant 0 : index
      %135 = vector.load %arg17[%c0_74, %c0_75] : memref<8x32xf32, #tpu.memory_space<vmem>>, vector<8x32xf32>
      tpu.vector_store %arg17[%c0_74, %c0_75], %133 {strides = array<i32>} : memref<8x32xf32, #tpu.memory_space<vmem>>, vector<8x32xf32>,
    } else {
    }
    %c0 = arith.constant 0 : index
    %c0_1 = arith.constant 0 : index
    %c0_2 = arith.constant 0 : index
    %3 = vector.load %arg2[%c0, %c0_1, %c0_2] : memref<1x8x32xf32, #tpu.memory_space<vmem>>, vector<1x8x32xf32>
    %4 = vector.shape_cast %3 : vector<1x8x32xf32> to vector<8x32xf32>
    %c0_3 = arith.constant 0 : index
    %c0_4 = arith.constant 0 : index
    %5 = vector.load %arg5[%c0_3, %c0_4] : memref<32x32xf32, #tpu.memory_space<vmem>>, vector<32x32xf32>
    %cst = arith.constant dense<0.000000e+00> : vector<8x32xf32>
    %6 = tpu.matmul %4, %5, %cst {dimension_numbers = #tpu.dot_dimension_numbers<[1], [0], [0], [1], [0, 0, 1, 1], [], []>} : vector<8x32xf32>, vector<32x32xf32>, vector<8x32xf32> -> vector<8x32xf32>
    %c0_5 = arith.constant 0 : index
    %c0_6 = arith.constant 0 : index
    %7 = vector.load %arg6[%c0_5, %c0_6] : memref<1x32xf32, #tpu.memory_space<vmem>>, vector<1x32xf32>
    %8 = vector.broadcast %7 : vector<1x32xf32> to vector<8x32xf32>
    %9 = arith.addf %6, %8 : vector<8x32xf32>
    %cst_7 = arith.constant 0.353553385 : f32
    %10 = vector.broadcast %cst_7 : f32 to vector<8x32xf32>
    %11 = arith.mulf %9, %10 : vector<8x32xf32>
    %c0_8 = arith.constant 0 : index
    %c0_9 = arith.constant 0 : index
    %12 = vector.load %arg16[%c0_8, %c0_9] : memref<8x32xf32, #tpu.memory_space<vmem>>, vector<8x32xf32>
    %c0_10 = arith.constant 0 : index
    %c0_11 = arith.constant 0 : index
    %13 = vector.load %arg17[%c0_10, %c0_11] : memref<8x32xf32, #tpu.memory_space<vmem>>, vector<8x32xf32>
    %cst_12 = arith.constant 0.000000e+00 : f32
    %14 = vector.broadcast %cst_12 : f32 to vector<8x32xf32>
    %15 = vector.extract_strided_slice %11 {offsets = [0, 0], sizes = [8, 8], strides = [1, 1]} : vector<8x32xf32> to vector<8x8xf32>
    %16 = vector.extract_strided_slice %12 {offsets = [0, 0], sizes = [8, 8], strides = [1, 1]} : vector<8x32xf32> to vector<8x8xf32>
    %17 = vector.extract_strided_slice %13 {offsets = [0, 0], sizes = [8, 8], strides = [1, 1]} : vector<8x32xf32> to vector<8x8xf32>
    %cst_13 = arith.constant dense<0.000000e+00> : vector<8x8xf32>
    %18 = tpu.matmul %15, %16, %cst_13 {dimension_numbers = #tpu.dot_dimension_numbers<[1], [1], [0], [0], [0, 0, 1, 0], [], []>} : vector<8x8xf32>, vector<8x8xf32>, vector<8x8xf32> -> vector<8x8xf32>
    %cst_14 = arith.constant dense<0xFF800000> : vector<8xf32>
    %19 = vector.multi_reduction <maximumf>, %18, %cst_14 [1] : vector<8x8xf32> to vector<8xf32>
    %20 = vector.shape_cast %19 : vector<8xf32> to vector<8x1xf32>
    %21 = vector.broadcast %20 : vector<8x1xf32> to vector<8x8xf32>
    %22 = arith.subf %18, %21 : vector<8x8xf32>
    %23 = math.exp %22 : vector<8x8xf32>
    %cst_15 = arith.constant dense<0.000000e+00> : vector<8xf32>
    %24 = vector.multi_reduction <add>, %23, %cst_15 [1] : vector<8x8xf32> to vector<8xf32>
    %25 = vector.shape_cast %24 : vector<8xf32> to vector<8x1xf32>
    %cst_16 = arith.constant dense<0.000000e+00> : vector<8x8xf32>
    %26 = tpu.matmul %23, %17, %cst_16 {dimension_numbers = #tpu.dot_dimension_numbers<[1], [0], [0], [1], [0, 0, 1, 1], [], []>} : vector<8x8xf32>, vector<8x8xf32>, vector<8x8xf32> -> vector<8x8xf32>
    %cst_17 = arith.constant 1.000000e+00 : f32
    %27 = vector.broadcast %cst_17 : f32 to vector<8x1xf32>
    %28 = arith.divf %27, %25 : vector<8x1xf32>
    %29 = vector.broadcast %28 : vector<8x1xf32> to vector<8x8xf32>
    %30 = arith.mulf %26, %29 : vector<8x8xf32>
    %c0_18 = arith.constant 0 : index
    %c0_19 = arith.constant 0 : index
    %31 = vector.load %arg11[%c0_18, %c0_19] : memref<32x32xf32, #tpu.memory_space<vmem>>, vector<8x32xf32>
    %cst_20 = arith.constant dense<0.000000e+00> : vector<8x32xf32>
    %32 = tpu.matmul %30, %31, %cst_20 {dimension_numbers = #tpu.dot_dimension_numbers<[1], [0], [0], [1], [0, 0, 1, 1], [], []>} : vector<8x8xf32>, vector<8x32xf32>, vector<8x32xf32> -> vector<8x32xf32>
    %33 = arith.addf %14, %32 : vector<8x32xf32>
    %34 = vector.extract_strided_slice %11 {offsets = [0, 8], sizes = [8, 8], strides = [1, 1]} : vector<8x32xf32> to vector<8x8xf32>
    %35 = vector.extract_strided_slice %12 {offsets = [0, 8], sizes = [8, 8], strides = [1, 1]} : vector<8x32xf32> to vector<8x8xf32>
    %36 = vector.extract_strided_slice %13 {offsets = [0, 8], sizes = [8, 8], strides = [1, 1]} : vector<8x32xf32> to vector<8x8xf32>
    %cst_21 = arith.constant dense<0.000000e+00> : vector<8x8xf32>
    %37 = tpu.matmul %34, %35, %cst_21 {dimension_numbers = #tpu.dot_dimension_numbers<[1], [1], [0], [0], [0, 0, 1, 0], [], []>} : vector<8x8xf32>, vector<8x8xf32>, vector<8x8xf32> -> vector<8x8xf32>
    %cst_22 = arith.constant dense<0xFF800000> : vector<8xf32>
    %38 = vector.multi_reduction <maximumf>, %37, %cst_22 [1] : vector<8x8xf32> to vector<8xf32>
    %39 = vector.shape_cast %38 : vector<8xf32> to vector<8x1xf32>
    %40 = vector.broadcast %39 : vector<8x1xf32> to vector<8x8xf32>
    %41 = arith.subf %37, %40 : vector<8x8xf32>
    %42 = math.exp %41 : vector<8x8xf32>
    %cst_23 = arith.constant dense<0.000000e+00> : vector<8xf32>
    %43 = vector.multi_reduction <add>, %42, %cst_23 [1] : vector<8x8xf32> to vector<8xf32>
    %44 = vector.shape_cast %43 : vector<8xf32> to vector<8x1xf32>
    %cst_24 = arith.constant dense<0.000000e+00> : vector<8x8xf32>
    %45 = tpu.matmul %42, %36, %cst_24 {dimension_numbers = #tpu.dot_dimension_numbers<[1], [0], [0], [1], [0, 0, 1, 1], [], []>} : vector<8x8xf32>, vector<8x8xf32>, vector<8x8xf32> -> vector<8x8xf32>
    %cst_25 = arith.constant 1.000000e+00 : f32
    %46 = vector.broadcast %cst_25 : f32 to vector<8x1xf32>
    %47 = arith.divf %46, %44 : vector<8x1xf32>
    %48 = vector.broadcast %47 : vector<8x1xf32> to vector<8x8xf32>
    %49 = arith.mulf %45, %48 : vector<8x8xf32>
    %c8 = arith.constant 8 : index
    %c0_26 = arith.constant 0 : index
    %50 = vector.load %arg11[%c8, %c0_26] : memref<32x32xf32, #tpu.memory_space<vmem>>, vector<8x32xf32>
    %cst_27 = arith.constant dense<0.000000e+00> : vector<8x32xf32>
    %51 = tpu.matmul %49, %50, %cst_27 {dimension_numbers = #tpu.dot_dimension_numbers<[1], [0], [0], [1], [0, 0, 1, 1], [], []>} : vector<8x8xf32>, vector<8x32xf32>, vector<8x32xf32> -> vector<8x32xf32>
    %52 = arith.addf %33, %51 : vector<8x32xf32>
    %53 = vector.extract_strided_slice %11 {offsets = [0, 16], sizes = [8, 8], strides = [1, 1]} : vector<8x32xf32> to vector<8x8xf32>
    %54 = vector.extract_strided_slice %12 {offsets = [0, 16], sizes = [8, 8], strides = [1, 1]} : vector<8x32xf32> to vector<8x8xf32>
    %55 = vector.extract_strided_slice %13 {offsets = [0, 16], sizes = [8, 8], strides = [1, 1]} : vector<8x32xf32> to vector<8x8xf32>
    %cst_28 = arith.constant dense<0.000000e+00> : vector<8x8xf32>
    %56 = tpu.matmul %53, %54, %cst_28 {dimension_numbers = #tpu.dot_dimension_numbers<[1], [1], [0], [0], [0, 0, 1, 0], [], []>} : vector<8x8xf32>, vector<8x8xf32>, vector<8x8xf32> -> vector<8x8xf32>
    %cst_29 = arith.constant dense<0xFF800000> : vector<8xf32>
    %57 = vector.multi_reduction <maximumf>, %56, %cst_29 [1] : vector<8x8xf32> to vector<8xf32>
    %58 = vector.shape_cast %57 : vector<8xf32> to vector<8x1xf32>
    %59 = vector.broadcast %58 : vector<8x1xf32> to vector<8x8xf32>
    %60 = arith.subf %56, %59 : vector<8x8xf32>
    %61 = math.exp %60 : vector<8x8xf32>
    %cst_30 = arith.constant dense<0.000000e+00> : vector<8xf32>
    %62 = vector.multi_reduction <add>, %61, %cst_30 [1] : vector<8x8xf32> to vector<8xf32>
    %63 = vector.shape_cast %62 : vector<8xf32> to vector<8x1xf32>
    %cst_31 = arith.constant dense<0.000000e+00> : vector<8x8xf32>
    %64 = tpu.matmul %61, %55, %cst_31 {dimension_numbers = #tpu.dot_dimension_numbers<[1], [0], [0], [1], [0, 0, 1, 1], [], []>} : vector<8x8xf32>, vector<8x8xf32>, vector<8x8xf32> -> vector<8x8xf32>
    %cst_32 = arith.constant 1.000000e+00 : f32
    %65 = vector.broadcast %cst_32 : f32 to vector<8x1xf32>
    %66 = arith.divf %65, %63 : vector<8x1xf32>
    %67 = vector.broadcast %66 : vector<8x1xf32> to vector<8x8xf32>
    %68 = arith.mulf %64, %67 : vector<8x8xf32>
    %c16 = arith.constant 16 : index
    %c0_33 = arith.constant 0 : index
    %69 = vector.load %arg11[%c16, %c0_33] : memref<32x32xf32, #tpu.memory_space<vmem>>, vector<8x32xf32>
    %cst_34 = arith.constant dense<0.000000e+00> : vector<8x32xf32>
    %70 = tpu.matmul %68, %69, %cst_34 {dimension_numbers = #tpu.dot_dimension_numbers<[1], [0], [0], [1], [0, 0, 1, 1], [], []>} : vector<8x8xf32>, vector<8x32xf32>, vector<8x32xf32> -> vector<8x32xf32>
    %71 = arith.addf %52, %70 : vector<8x32xf32>
    %72 = vector.extract_strided_slice %11 {offsets = [0, 24], sizes = [8, 8], strides = [1, 1]} : vector<8x32xf32> to vector<8x8xf32>
    %73 = vector.extract_strided_slice %12 {offsets = [0, 24], sizes = [8, 8], strides = [1, 1]} : vector<8x32xf32> to vector<8x8xf32>
    %74 = vector.extract_strided_slice %13 {offsets = [0, 24], sizes = [8, 8], strides = [1, 1]} : vector<8x32xf32> to vector<8x8xf32>
    %cst_35 = arith.constant dense<0.000000e+00> : vector<8x8xf32>
    %75 = tpu.matmul %72, %73, %cst_35 {dimension_numbers = #tpu.dot_dimension_numbers<[1], [1], [0], [0], [0, 0, 1, 0], [], []>} : vector<8x8xf32>, vector<8x8xf32>, vector<8x8xf32> -> vector<8x8xf32>
    %cst_36 = arith.constant dense<0xFF800000> : vector<8xf32>
    %76 = vector.multi_reduction <maximumf>, %75, %cst_36 [1] : vector<8x8xf32> to vector<8xf32>
    %77 = vector.shape_cast %76 : vector<8xf32> to vector<8x1xf32>
    %78 = vector.broadcast %77 : vector<8x1xf32> to vector<8x8xf32>
    %79 = arith.subf %75, %78 : vector<8x8xf32>
    %80 = math.exp %79 : vector<8x8xf32>
    %cst_37 = arith.constant dense<0.000000e+00> : vector<8xf32>
    %81 = vector.multi_reduction <add>, %80, %cst_37 [1] : vector<8x8xf32> to vector<8xf32>
    %82 = vector.shape_cast %81 : vector<8xf32> to vector<8x1xf32>
    %cst_38 = arith.constant dense<0.000000e+00> : vector<8x8xf32>
    %83 = tpu.matmul %80, %74, %cst_38 {dimension_numbers = #tpu.dot_dimension_numbers<[1], [0], [0], [1], [0, 0, 1, 1], [], []>} : vector<8x8xf32>, vector<8x8xf32>, vector<8x8xf32> -> vector<8x8xf32>
    %cst_39 = arith.constant 1.000000e+00 : f32
    %84 = vector.broadcast %cst_39 : f32 to vector<8x1xf32>
    %85 = arith.divf %84, %82 : vector<8x1xf32>
    %86 = vector.broadcast %85 : vector<8x1xf32> to vector<8x8xf32>
    %87 = arith.mulf %83, %86 : vector<8x8xf32>
    %c24 = arith.constant 24 : index
    %c0_40 = arith.constant 0 : index
    %88 = vector.load %arg11[%c24, %c0_40] : memref<32x32xf32, #tpu.memory_space<vmem>>, vector<8x32xf32>
    %cst_41 = arith.constant dense<0.000000e+00> : vector<8x32xf32>
    %89 = tpu.matmul %87, %88, %cst_41 {dimension_numbers = #tpu.dot_dimension_numbers<[1], [0], [0], [1], [0, 0, 1, 1], [], []>} : vector<8x8xf32>, vector<8x32xf32>, vector<8x32xf32> -> vector<8x32xf32>
    %90 = arith.addf %71, %89 : vector<8x32xf32>
    %c0_42 = arith.constant 0 : index
    %c0_43 = arith.constant 0 : index
    %91 = vector.load %arg12[%c0_42, %c0_43] : memref<1x32xf32, #tpu.memory_space<vmem>>, vector<1x32xf32>
    %92 = vector.broadcast %91 : vector<1x32xf32> to vector<8x32xf32>
    %93 = arith.addf %90, %92 : vector<8x32xf32>
    %94 = arith.addf %93, %4 : vector<8x32xf32>
    %cst_44 = arith.constant dense<0.000000e+00> : vector<8xf32>
    %95 = vector.multi_reduction <add>, %94, %cst_44 [1] : vector<8x32xf32> to vector<8xf32>
    %96 = vector.shape_cast %95 : vector<8xf32> to vector<8x1xf32>
    %cst_45 = arith.constant 3.200000e+01 : f32
    %97 = vector.broadcast %cst_45 : f32 to vector<8x1xf32>
    %98 = arith.divf %96, %97 : vector<8x1xf32>
    %99 = vector.broadcast %98 : vector<8x1xf32> to vector<8x32xf32>
    %100 = arith.subf %94, %99 : vector<8x32xf32>
    %101 = arith.mulf %100, %100 : vector<8x32xf32>
    %cst_46 = arith.constant dense<0.000000e+00> : vector<8xf32>
    %102 = vector.multi_reduction <add>, %101, %cst_46 [1] : vector<8x32xf32> to vector<8xf32>
    %103 = vector.shape_cast %102 : vector<8xf32> to vector<8x1xf32>
    %cst_47 = arith.constant 3.200000e+01 : f32
    %104 = vector.broadcast %cst_47 : f32 to vector<8x1xf32>
    %105 = arith.divf %103, %104 : vector<8x1xf32>
    %cst_48 = arith.constant 9.99999974E-6 : f32
    %106 = vector.broadcast %cst_48 : f32 to vector<8x1xf32>
    %107 = arith.addf %105, %106 : vector<8x1xf32>
    %108 = math.rsqrt %107 : vector<8x1xf32>
    %109 = vector.broadcast %108 : vector<8x1xf32> to vector<8x32xf32>
    %110 = arith.mulf %100, %109 : vector<8x32xf32>
    %c0_49 = arith.constant 0 : index
    %c0_50 = arith.constant 0 : index
    %111 = vector.load %arg13[%c0_49, %c0_50] : memref<1x32xf32, #tpu.memory_space<vmem>>, vector<1x32xf32>
    %112 = vector.broadcast %111 : vector<1x32xf32> to vector<8x32xf32>
    %113 = arith.mulf %110, %112 : vector<8x32xf32>
    %c0_51 = arith.constant 0 : index
    %c0_52 = arith.constant 0 : index
    %114 = vector.load %arg14[%c0_51, %c0_52] : memref<1x32xf32, #tpu.memory_space<vmem>>, vector<1x32xf32>
    %115 = vector.broadcast %114 : vector<1x32xf32> to vector<8x32xf32>
    %116 = arith.addf %113, %115 : vector<8x32xf32>
    %c0_53 = arith.constant 0 : index
    %c0_54 = arith.constant 0 : index
    %c0_55 = arith.constant 0 : index
    %117 = vector.load %arg15[%c0_53, %c0_54, %c0_55] : memref<1x8x32xf32, #tpu.memory_space<vmem>>, vector<1x8x32xf32>
    %118 = vector.shape_cast %117 : vector<1x8x32xf32> to vector<8x32xf32>
    %119 = vector.shape_cast %116 : vector<8x32xf32> to vector<1x8x32xf32>
    tpu.vector_store %arg15[%c0_53, %c0_54, %c0_55], %119 {strides = array<i32>} : memref<1x8x32xf32, #tpu.memory_space<vmem>>, vector<1x8x32xf32>,
    return
  }
  func.func @transform_0(%arg0: i32, %arg1: i32) -> (i32, i32, i32) {
    %c0_i32 = arith.constant 0 : i32
    %c0_i32_0 = arith.constant 0 : i32
    return %arg0, %arg1, %c0_i32 : i32, i32, i32
  }
  func.func @transform_1(%arg0: i32, %arg1: i32) -> (i32, i32, i32) {
    %c0_i32 = arith.constant 0 : i32
    %c0_i32_0 = arith.constant 0 : i32
    %c0_i32_1 = arith.constant 0 : i32
    return %arg0, %c0_i32, %c0_i32_0 : i32, i32, i32
  }
  func.func @transform_2(%arg0: i32, %arg1: i32) -> (i32, i32, i32) {
    %c0_i32 = arith.constant 0 : i32
    %c0_i32_0 = arith.constant 0 : i32
    %c0_i32_1 = arith.constant 0 : i32
    return %arg0, %c0_i32, %c0_i32_0 : i32, i32, i32
  }
  func.func @transform_3(%arg0: i32, %arg1: i32) -> (i32, i32) {
    %c0_i32 = arith.constant 0 : i32
    %c0_i32_0 = arith.constant 0 : i32
    %c0_i32_1 = arith.constant 0 : i32
    return %c0_i32, %c0_i32_0 : i32, i32
  }
  func.func @transform_4(%arg0: i32, %arg1: i32) -> (i32, i32) {
    %c0_i32 = arith.constant 0 : i32
    %c0_i32_0 = arith.constant 0 : i32
    %c0_i32_1 = arith.constant 0 : i32
    return %c0_i32, %c0_i32_0 : i32, i32
  }
  func.func @transform_5(%arg0: i32, %arg1: i32) -> (i32, i32) {
    %c0_i32 = arith.constant 0 : i32
    %c0_i32_0 = arith.constant 0 : i32
    %c0_i32_1 = arith.constant 0 : i32
    return %c0_i32, %c0_i32_0 : i32, i32
  }
  func.func @transform_6(%arg0: i32, %arg1: i32) -> (i32, i32) {
    %c0_i32 = arith.constant 0 : i32
    %c0_i32_0 = arith.constant 0 : i32
    %c0_i32_1 = arith.constant 0 : i32
    return %c0_i32, %c0_i32_0 : i32, i32
  }
  func.func @transform_7(%arg0: i32, %arg1: i32) -> (i32, i32) {
    %c0_i32 = arith.constant 0 : i32
    %c0_i32_0 = arith.constant 0 : i32
    %c0_i32_1 = arith.constant 0 : i32
    return %c0_i32, %c0_i32_0 : i32, i32
  }
  func.func @transform_8(%arg0: i32, %arg1: i32) -> (i32, i32) {
    %c0_i32 = arith.constant 0 : i32
    %c0_i32_0 = arith.constant 0 : i32
    %c0_i32_1 = arith.constant 0 : i32
    return %c0_i32, %c0_i32_0 : i32, i32
  }
  func.func @transform_9(%arg0: i32, %arg1: i32) -> (i32, i32) {
    %c0_i32 = arith.constant 0 : i32
    %c0_i32_0 = arith.constant 0 : i32
    %c0_i32_1 = arith.constant 0 : i32
    return %c0_i32, %c0_i32_0 : i32, i32
  }
  func.func @transform_10(%arg0: i32, %arg1: i32) -> (i32, i32) {
    %c0_i32 = arith.constant 0 : i32
    %c0_i32_0 = arith.constant 0 : i32
    %c0_i32_1 = arith.constant 0 : i32
    return %c0_i32, %c0_i32_0 : i32, i32
  }
  func.func @transform_11(%arg0: i32, %arg1: i32) -> (i32, i32) {
    %c0_i32 = arith.constant 0 : i32
    %c0_i32_0 = arith.constant 0 : i32
    %c0_i32_1 = arith.constant 0 : i32
    return %c0_i32, %c0_i32_0 : i32, i32
  }
  func.func @transform_12(%arg0: i32, %arg1: i32) -> (i32, i32) {
    %c0_i32 = arith.constant 0 : i32
    %c0_i32_0 = arith.constant 0 : i32
    %c0_i32_1 = arith.constant 0 : i32
    return %c0_i32, %c0_i32_0 : i32, i32
  }
  func.func @transform_13(%arg0: i32, %arg1: i32) -> (i32, i32, i32) {
    %c0_i32 = arith.constant 0 : i32
    %c0_i32_0 = arith.constant 0 : i32
    return %arg0, %arg1, %c0_i32 : i32, i32, i32
  }
}

</mosaic_0001>

<bundles_post_ra>
// kernel: tpu_custom_call.1
= control target key start
LH: loop header
LB: loop body
LE: loop exit
PB: predicated region body
PF: predicated region fallthrough
CT: control target
= control target key end

     0   :  { %s3448_s0 = inlined_call_operand.hbm [shape: f32[2,16,32], index: 0, kind: input, shape index: {}]   ;;  %s3449_s1 = inlined_call_operand.hbm [shape: f32[2,8,32], index: 1, kind: input, shape index: {}]   ;;  %s3450_s2 = inlined_call_operand.hbm [shape: f32[2,8,32], index: 2, kind: input, shape index: {}]   ;;  %s3451_s3 = inlined_call_operand.hbm [shape: f32[32,32], index: 3, kind: input, shape index: {}]   ;;  %s3452_s4 = inlined_call_operand.vmem [shape: f32[1,32], index: 4, kind: input, shape index: {}]   ;;  %s3453_s5 = inlined_call_operand.hbm [shape: f32[32,32], index: 5, kind: input, shape index: {}]   ;;  %s3454_s6 = inlined_call_operand.vmem [shape: f32[1,32], index: 6, kind: input, shape index: {}]   ;;  %s3455_s7 = inlined_call_operand.hbm [shape: f32[32,32], index: 7, kind: input, shape index: {}]   ;;  %s3456_s8 = inlined_call_operand.hbm [shape: f32[1,32], index: 8, kind: input, shape index: {}]   ;;  %s3457_s9 = inlined_call_operand.vmem [shape: f32[32,32], index: 9, kind: input, shape index: {}]   ;;  %s3458_s10 = inlined_call_operand.vmem [shape: f32[1,32], index: 10, kind: input, shape index: {}]   ;;  %s3459_s11 = inlined_call_operand.vmem [shape: f32[1,32], index: 11, kind: input, shape index: {}]   ;;  %s3460_s12 = inlined_call_operand.vmem [shape: f32[1,32], index: 12, kind: input, shape index: {}]   ;;  %s3461_s13 = inlined_call_operand.hbm [shape: f32[2,16,32], index: 13, kind: output, shape index: {}]  }
   0x1   :  { %3485 = sst [smem:[#allocation30_spill]] %s3449_s1 }
   0x2   :  { %3486 = sst [smem:[#allocation31_spill]] %s3450_s2 }
   0x3   :  { %3487 = sst [smem:[#allocation32_spill]] %s3451_s3 }
   0x4   :  { %3488 = sst [smem:[#allocation33_spill]] %s3452_s4 }
   0x5   :  { %3489 = sst [smem:[#allocation34_spill]] %s3453_s5 }
   0x6   :  { %3490 = sst [smem:[#allocation35_spill]] %s3454_s6 }
   0x7   :  { %3491 = sst [smem:[#allocation36_spill]] %s3455_s7 }
   0x8   :  { %3492 = sst [smem:[#allocation37_spill]] %s3456_s8 }
   0x9   :  { %3493 = sst [smem:[#allocation38_spill]] %s3457_s9 }
   0xa   :  { %3494 = sst [smem:[#allocation39_spill]] %s3458_s10 }
   0xb   :  { %3495 = sst [smem:[#allocation40_spill]] %s3459_s11 }
   0xc   :  { %3496 = sst [smem:[#allocation41_spill]] %s3460_s12 }
   0xd   :  { %3497 = sst [smem:[#allocation42_spill]] %s3461_s13 }
   0xe   :  { %18 = vsyncpa [#allocation5], 0 }
   0xf   :  { %20 = vsyncpa [#allocation5 + $0x1], 0 }
  0x10   :  { %21 = vsyncpa [#allocation8], 0 }
  0x11   :  { %23 = vsyncpa [#allocation8 + $0x1], 0 }
  0x12   :  { %24 = vsyncpa [#allocation11], 0 }
  0x13   :  { %25 = vsyncpa [#allocation14], 0 }
  0x14   :  { %26 = vsyncpa [#allocation6], 0 }
  0x15   :  { %28 = vsyncpa [#allocation6 + $0x1], 0  ;;  %s2862_s25 = smov 0   ;;  %s2864_s26 = smov 0  }
  0x16   :  { %s2866_s27 = smov 0   ;;  %s2868_s28 = smov 0  }
  0x17   :  { %s2870_s29 = smov 0   ;;  %s2872_s30 = smov 0  }
  0x18   :  { %s2874_s14 = smov 0   ;;  %s2876_s15 = smov 0  }
  0x19   :  { %s2878_s16 = smov 0   ;;  %s2880_s17 = smov 0  }
  0x1a   :  { %s2882_s18 = smov 0  }
  0x1b LB: > { %3498 = sst [smem:[#allocation22_spill]] %s2743_s28  ;;  %s2918_s19 = sadd.s32 4294967295, %s2771_s18   ;;  %s2771_s18 = sphi %s2882_s18, %s34_s18   ;;  %s2767_s17 = sphi %s2880_s17, %s3567_s17   ;;  %s2763_s16 = sphi %s2878_s16, %s3566_s16   ;;  %s2759_s15 = sphi %s2876_s15, %s3565_s15   ;;  %s2755_s14 = sphi %s2874_s14, %s3564_s14   ;;  %s2751_s30 = sphi %s2872_s30, %s3563_s30   ;;  %s2747_s29 = sphi %s2870_s29, %s3562_s29   ;;  %s2743_s28 = sphi %s2868_s28, %s3561_s28   ;;  %s2739_s27 = sphi %s2866_s27, %s3560_s27   ;;  %s2735_s26 = sphi %s2864_s26, %s3559_s26   ;;  %s2731_s25 = sphi %s2862_s25, %s3558_s25  }
  0x1c   : > { %3499 = sst [smem:[#allocation23_spill]] %s2755_s14  ;;  %p2050_p0 = scmp.ge.s32.totalorder %s2771_s18, 1 }
  0x1d   : > { %3500 = sst [smem:[#allocation24_spill]] %s2759_s15  ;;  %p3464_p1 = scmp.eq.s32.totalorder %s2918_s19, 0 }
  0x1e   : > { %p369_p2 = scmp.lt.s32.totalorder %s2771_s18, 5  ;;  %s2773_s21 = smov [#allocation10]  }
  0x1f   : > { %s381_s22 = sshll.u32 %s2773_s21, 4  ;;  %s2774_s24 = smov [#allocation13]   ;;  %s382_s22 = int_to_ptr.vmem [resolvable:$true] %s381_s22 }
  0x20   : > { %p2923_p3 = pnand %p2050_p0, %p369_p2  ;;  %s413_s13 = sshll.u32 %s2774_s24, 4  ;;  %s2935_s13 = int_to_ptr.vmem [resolvable:$true] %s413_s13 }
  0x21   : > { %s3504_s3 = sld [smem:[#allocation32_spill]] }
  0x22   : > { %s3501_s20 = scalar_select %p2923_p3, 1, 0 }
  0x23   : > { %p2277_p4 = pneg %p2923_p3 }
  0x24   : > { %3502 = sst [smem:[#allocation25_spill]] %s3501_s20 }
  0x25   : > { %p2931_p5 = pnand %p2277_p4, %p3464_p1 }
  0x27   : > { %s3503_s23 = scalar_select %p2931_p5, 1, 0 }
  0x28   : > { %s2435_s15 = scalar_lea.hbm %s3504_s3, 512  ;;  %p2945_p7 = pneg %p2931_p5 }
  0x29   : > { %p2436_p6 = scmp.ne.s32.totalorder %s3504_s3, %s2435_s15  ;;  %p2442_p10 = scmp.lt.u32.totalorder %s2435_s15, %s3504_s3 }
  0x2b   : > { %p2438_p8 = pnand %p2945_p7, %p2436_p6 }
  0x2d   : > { %p2439_p9 = pneg %p2438_p8 }
  0x2f   : > { %p2444_p11 = pnand %p2442_p10, %p2439_p9 }
  0x31   : > { %2447 = shalt.err (!%p2444_p11)
}
  0x32   : > { %s2448_s11 = scalar_lea.vmem %s382_s22, 512  ;;  %p2456_p2 = scmp.lt.s32.totalorder %s382_s22, %s382_s22 }
  0x33   : > { %p2449_p12 = scmp.ne.s32.totalorder %s382_s22, %s2448_s11  ;;  %p2457_p4 = scmp.lt.s32.totalorder %s2448_s11, %s2448_s11 }
  0x35   : > { %p2451_p13 = pnand %p2449_p12, %p2945_p7  ;;  %p2458_p1 = por %p2457_p4, %p2456_p2 }
  0x37   : > { %p2452_p0 = pneg %p2451_p13 }
  0x39   : > { %p2459_p3 = pnand %p2458_p1, %p2452_p0 }
  0x3b   : > { %2462 = shalt.err (!%p2459_p3)
}
  0x3c   : > { %s3469_s9 = smov 128   ;;  %s3470_s10 = smov 8  }
  0x3d   : > { %2280 = dma.hbm_to_vmem [thread:$0]  (!%p2931_p5), %s3504_s3, 512, %s382_s22, [#allocation11], %s3469_s9, %s3469_s9, %s3470_s10  }
  0x3e   : > { %s3506_s7 = sld [smem:[#allocation36_spill]] }
  0x44   : > { %s2463_s6 = scalar_lea.hbm %s3506_s7, 512 }
  0x45   : > { %p2464_p1 = scmp.ne.s32.totalorder %s3506_s7, %s2463_s6  ;;  %p2470_p8 = scmp.lt.u32.totalorder %s2463_s6, %s3506_s7 }
  0x47   : > { %p2466_p3 = pnand %p2464_p1, %p2945_p7 }
  0x49   : > { %p2467_p6 = pneg %p2466_p3 }
  0x4b   : > { %p2472_p9 = pnand %p2470_p8, %p2467_p6 }
  0x4d   : > { %2475 = shalt.err (!%p2472_p9)
}
  0x4e   : > { %s2476_s22 = scalar_lea.vmem %s2935_s13, 512  ;;  %p2484_p13 = scmp.lt.s32.totalorder %s2935_s13, %s2935_s13 }
  0x4f   : > { %p2477_p10 = scmp.ne.s32.totalorder %s2935_s13, %s2476_s22  ;;  %p2485_p0 = scmp.lt.s32.totalorder %s2476_s22, %s2476_s22 }
  0x51   : > { %p2479_p11 = pnand %p2477_p10, %p2945_p7  ;;  %p2486_p2 = por %p2485_p0, %p2484_p13 }
  0x53   : > { %p2480_p12 = pneg %p2479_p11 }
  0x55   : > { %p2487_p4 = pnand %p2486_p2, %p2480_p12 }
  0x57   : > { %2490 = shalt.err (!%p2487_p4)
}
  0x58   : > { %2286 = dma.hbm_to_vmem [thread:$0]  (!%p2931_p5), %s3506_s7, 512, %s2935_s13, [#allocation14], %s3469_s9, %s3469_s9, %s3470_s10  }
  0x59   : > { %p3472_p1 = scmp.eq.s32.totalorder %s2771_s18, 0  ;;  %p88_p3 = scmp.ne.s32.totalorder %s2739_s27, %s2735_s26 }
  0x5a   : > { %p94_p6 = scmp.ne.s32.totalorder %s2735_s26, %s2731_s25  ;;  %p3471_p8 = scmp.lt.s32.totalorder %s2771_s18, 4 }
  0x5b   : > { %s470_s14 = sand.u32 1, %s2771_s18   ;;  %p90_p9 = por %p88_p3, %p3472_p1 }
  0x5c   : > { %p3507_p10 = scmp.eq.s32.totalorder %s2918_s19, 0  ;;  %s472_s4 = sand.u32 1, %s2739_s27  }
  0x5d   : > { %s3006_s12 = sshll.u32 %s472_s4, 3  ;;  %s3468_s15 = sshll.u32 %s2767_s17, 7 }
  0x5e   : > { %p3001_p11 = por %p94_p6, %p3507_p10  ;;  %s3509_s1 = sld [smem:[#allocation30_spill]] }
  0x5f   : > { %s474_s25 = scalar_lea.vmem [#allocation7], %s3006_s12  ;;  %p3019_p12 = pnand %p3471_p8, %p90_p9 }
  0x60   : > { %s3508_s20 = scalar_select %p3001_p11, 1, 0 }
  0x61   : > { %s481_s22 = sshll.u32 %s474_s25, 4  ;;  %s3026_s4 = scalar_lea.sflag [#allocation8], %s470_s14  ;;  %s3024_s22 = int_to_ptr.vmem [resolvable:$true] %s481_s22 }
  0x62   : > { %p3476_p0 = pneg %p3019_p12 }
  0x64   : > { %s3014_s11 = scalar_lea.hbm %s3509_s1, %s3468_s15  ;;  %s2496_s15 = scalar_lea.hbm %s3509_s1, 256 }
  0x65   : > { %s2491_s24 = scalar_lea.hbm %s3014_s11, 128  ;;  %p2497_p3 = scmp.lt.u32.totalorder %s3014_s11, %s3509_s1 }
  0x66   : > { %p2492_p13 = scmp.ne.s32.totalorder %s3014_s11, %s2491_s24  ;;  %p2498_p6 = scmp.lt.u32.totalorder %s2496_s15, %s2491_s24 }
  0x67   : > { %p2500_p10 = scmp.lt.u32.totalorder %s2491_s24, %s3014_s11 }
  0x68   : > { %p2494_p2 = pnand %p3476_p0, %p2492_p13  ;;  %p2499_p9 = por %p2498_p6, %p2497_p3 }
  0x6a   : > { %p2495_p4 = pneg %p2494_p2  ;;  %p2501_p8 = por %p2500_p10, %p2499_p9 }
  0x6c   : > { %p2502_p1 = pnand %p2501_p8, %p2495_p4 }
  0x6e   : > { %2505 = shalt.err (!%p2502_p1)
}
  0x6f   : > { %s2506_s14 = scalar_lea.vmem %s3024_s22, 128  ;;  %s2777_s13 = smov [#allocation7]  }
  0x70   : > { %p2507_p13 = scmp.ne.s32.totalorder %s3024_s22, %s2506_s14  ;;  %s2511_s25 = sshll.u32 %s2777_s13, 4  ;;  %s2512_s25 = int_to_ptr.vmem [resolvable:$false] %s2511_s25 }
  0x71   : > { %s2513_s9 = scalar_lea.vmem %s2512_s25, 256  ;;  %p2514_p5 = scmp.lt.s32.totalorder %s3024_s22, %s2512_s25 }
  0x72   : > { %p2509_p2 = pnand %p2507_p13, %p3476_p0  ;;  %p2515_p3 = scmp.lt.s32.totalorder %s2513_s9, %s2506_s14 }
  0x74   : > { %p2510_p11 = pneg %p2509_p2  ;;  %p2516_p6 = por %p2515_p3, %p2514_p5 }
  0x76   : > { %p2517_p9 = pnand %p2516_p6, %p2510_p11 }
  0x78   : > { %2520 = shalt.err (!%p2517_p9)
}
  0x79   : > { %2296 = dma.hbm_to_vmem [thread:$0]  (!%p3019_p12), %s3014_s11, 128, %s3024_s22, %s3026_s4  }
  0x7a   : > { %s2778_s10 = smov [#allocation12]   ;;  %s2779_s24 = smov [#allocation15]  }
  0x7b   : > { %s397_s15 = sshll.u32 %s2778_s10, 4  ;;  %s427_s6 = sshll.u32 %s2779_s24, 4  ;;  %s398_s15 = int_to_ptr.vmem [resolvable:$true] %s397_s15  ;;  %s3054_s6 = int_to_ptr.vmem [resolvable:$true] %s427_s6 }
  0x7c   : > { %s3511_s5 = sld [smem:[#allocation34_spill]] }
  0x82   : > { %s2521_s14 = scalar_lea.hbm %s3511_s5, 512 }
  0x83   : > { %p2522_p5 = scmp.ne.s32.totalorder %s3511_s5, %s2521_s14  ;;  %p2528_p11 = scmp.lt.u32.totalorder %s2521_s14, %s3511_s5 }
  0x85   : > { %p2524_p1 = pnand %p2522_p5, %p2945_p7 }
  0x87   : > { %p2525_p8 = pneg %p2524_p1 }
  0x89   : > { %p2530_p4 = pnand %p2528_p11, %p2525_p8 }
  0x8b   : > { %2533 = shalt.err (!%p2530_p4)
}
  0x8c   : > { %s2534_s22 = scalar_lea.vmem %s398_s15, 512  ;;  %p2542_p3 = scmp.lt.s32.totalorder %s398_s15, %s398_s15 }
  0x8d   : > { %p2535_p10 = scmp.ne.s32.totalorder %s398_s15, %s2534_s22  ;;  %p2543_p6 = scmp.lt.s32.totalorder %s2534_s22, %s2534_s22 }
  0x8f   : > { %p2537_p13 = pnand %p2535_p10, %p2945_p7  ;;  %p2544_p9 = por %p2543_p6, %p2542_p3 }
  0x91   : > { %p2538_p2 = pneg %p2537_p13 }
  0x93   : > { %p2545_p0 = pnand %p2544_p9, %p2538_p2 }
  0x95   : > { %2548 = shalt.err (!%p2545_p0)
}
  0x96   : > { %p3512_p5 = scmp.ne.s32.totalorder %s3503_s23, 0  ;;  %s3513_s1 = smov 8  }
  0x97   : > { %s3514_s10 = smov 128   ;;  %s3515_s8 = sld [smem:[#allocation37_spill]] }
  0x98   : > { %2283 = dma.hbm_to_vmem [thread:$0]  (!%p3512_p5), %s3511_s5, 512, %s398_s15, [#allocation11], %s3514_s10, %s3514_s10, %s3513_s1  }
  0x9d   : > { %s2549_s14 = scalar_lea.hbm %s3515_s8, 16 }
  0x9e   : > { %p2550_p1 = scmp.ne.s32.totalorder %s3515_s8, %s2549_s14  ;;  %p2556_p11 = scmp.lt.u32.totalorder %s2549_s14, %s3515_s8 }
  0xa0   : > { %p2552_p0 = pnand %p2550_p1, %p2945_p7 }
  0xa2   : > { %p2553_p8 = pneg %p2552_p0 }
  0xa4   : > { %p2558_p4 = pnand %p2556_p11, %p2553_p8 }
  0xa6   : > { %2561 = shalt.err (!%p2558_p4)
}
  0xa7   : > { %s2562_s15 = scalar_lea.vmem %s3054_s6, 16  ;;  %s2569_s1 = scalar_lea.vmem %s3054_s6, 32 }
  0xa8   : > { %p2563_p10 = scmp.ne.s32.totalorder %s3054_s6, %s2562_s15  ;;  %p2570_p3 = scmp.lt.s32.totalorder %s3054_s6, %s3054_s6 }
  0xa9   : > { %p2571_p6 = scmp.lt.s32.totalorder %s2569_s1, %s2562_s15 }
  0xaa   : > { %p2565_p13 = pnand %p2563_p10, %p2945_p7 }
  0xab   : > { %p2572_p9 = por %p2571_p6, %p2570_p3 }
  0xac   : > { %p2566_p2 = pneg %p2565_p13 }
  0xae   : > { %p2573_p1 = pnand %p2572_p9, %p2566_p2 }
  0xb0   : > { %2576 = shalt.err (!%p2573_p1)
}
  0xb1   : > { %2289 = dma.hbm_to_vmem [thread:$0]  (!%p3512_p5), %s3515_s8, 16, %s3054_s6, [#allocation14]  }
  0xb2   : > { %s2049_s21 = sadd.s32 4294967294, %s2771_s18   ;;  %s43_s23 = sadd.s32 1, %s2763_s16 }
  0xb3   : > { %p44_p7 = scmp.ge.s32.totalorder %s43_s23, 2  ;;  %s46_s3 = sadd.s32 1, %s2767_s17 }
  0xb4   : > { %s55_s24 = sadd.s32 1, %s2751_s30  ;;  %p62_p0 = scmp.ne.s32.totalorder %s2751_s30, %s2747_s29 }
  0xb5   : > { %s3569_s23 = smov (%p44_p7, %s43_s23), 0  ;;  %s3571_s3 = smov (!%p44_p7, %s46_s3), %s2767_s17 }
  0xb6   : > { %3516 = sst [smem:[#allocation26_spill]] %s3569_s23  ;;  %s51_s13 = ssub.s32 %s2763_s16, %s3569_s23 }
  0xb7   : > { %p3517_p8 = scmp.eq.s32.totalorder %s2771_s18, 0  ;;  %p48_p5 = scmp.ge.s32.totalorder %s3571_s3, 2 }
  0xb8   : > { %p68_p4 = scmp.ne.s32.totalorder %s2747_s29, %s2743_s28  ;;  %p356_p10 = scmp.eq.s32.totalorder %s2918_s19, 3 }
  0xb9   : > { %p3114_p11 = por %p3517_p8, %p62_p0  ;;  %p362_p13 = scmp.eq.s32.totalorder %s2049_s21, 3 }
  0xba   : > { %s3573_s3 = smov (%p48_p5, %s3571_s3), 0  ;;  %p3520_p2 = scmp.eq.s32.totalorder %s2918_s19, 0 }
  0xbb   : > { %3519 = sst [smem:[#allocation27_spill]] %s3573_s3  ;;  %p3129_p6 = por %p356_p10, %p62_p0 }
  0xbc   : > { %p3125_p3 = por %p3520_p2, %p68_p4  ;;  %s50_s9 = ssub.s32 %s2767_s17, %s3573_s3 }
  0xbd   : > { %s3522_s14 = scalar_select %p3129_p6, 1, 0 }
  0xbe   : > { %s3521_s25 = scalar_select %p3125_p3, 1, 0 }
  0xbf   : > { %3523 = sst [smem:[#allocation28_spill]] %s3522_s14  ;;  %p3135_p9 = por %p362_p13, %p68_p4 }
  0xc0   : > { %s52_s22 = sor.u32 %s51_s13, %s50_s9  ;;  %p79_p1 = scmp.eq.s32.totalorder %s50_s9, 0 }
  0xc1   : > { %s3524_s11 = scalar_select %p3135_p9, 1, 0 }
  0xc2   : > { %p53_p7 = scmp.eq.s32.totalorder %s52_s22, 0  ;;  %s450_s15 = sand.u32 1, %s2751_s30  }
  0xc3   : > { %3525 = sst [smem:[#allocation29_spill]] %s3524_s11  ;;  %s3526_s1 = sadd.s32 1, %s2739_s27 }
  0xc4   : > { %s3143_s7 = scalar_select %p79_p1, %s2739_s27, %s3526_s1  }
  0xc5   : > { %s3146_s10 = scalar_select %p53_p7, %s2751_s30, %s55_s24  }
  0xc6   : > { %s2056_s21 = sshll.u32 %s450_s15, 3  ;;  %s2057_s5 = sshll.u32 %s2767_s17, 1 }
  0xc7   : > { %s459_s8 = sadd.s32 %s2763_s16, %s2057_s5  ;;  %s454_s3 = scalar_lea.vmem [#allocation4], %s2056_s21 }
  0xc8   : > { %s463_s23 = sshll.u32 %s454_s3, 4  ;;  %s2058_s28 = sshll.u32 %s459_s8, 7  ;;  %s3150_s23 = int_to_ptr.vmem [resolvable:$true] %s463_s23 }
  0xc9   : > { %s3155_s13 = scalar_lea.hbm %s3448_s0, %s2058_s28  ;;  %p3527_p0 = scmp.lt.s32.totalorder %s2771_s18, 4 }
  0xca   : > { %s3529_s5 = sshll.u32 %s2767_s17, 7  ;;  %s3530_s9 = sld [smem:[#allocation31_spill]] }
  0xcb   : > { %p3161_p8 = pnand %p3527_p0, %p3114_p11  ;;  %s492_s28 = scalar_lea.vmem [#allocation9], %s3006_s12 }
  0xcc   : > { %s499_s14 = sshll.u32 %s492_s28, 4  ;;  %s451_s6 = scalar_lea.sflag [#allocation5], %s450_s15  ;;  %s3173_s14 = int_to_ptr.vmem [resolvable:$true] %s499_s14 }
  0xcd   : > { %s2577_s11 = scalar_lea.hbm %s3155_s13, 128  ;;  %p2579_p11 = pneg %p3161_p8 }
  0xce   : > { %p2578_p5 = scmp.ne.s32.totalorder %s3155_s13, %s2577_s11  ;;  %s2582_s3 = scalar_lea.hbm %s3448_s0, 512 }
  0xcf   : > { %p2583_p13 = scmp.lt.u32.totalorder %s3155_s13, %s3448_s0  ;;  %p2584_p2 = scmp.lt.u32.totalorder %s2582_s3, %s2577_s11 }
  0xd0   : > { %s3170_s22 = scalar_lea.hbm %s3530_s9, %s3529_s5  ;;  %p2580_p4 = pnand %p2579_p11, %p2578_p5 }
  0xd1   : > { %p2585_p1 = por %p2584_p2, %p2583_p13  ;;  %p2586_p7 = scmp.lt.u32.totalorder %s2577_s11, %s3155_s13 }
  0xd2   : > { %p2581_p10 = pneg %p2580_p4 }
  0xd3   : > { %p2587_p0 = por %p2586_p7, %p2585_p1 }
  0xd5   : > { %p2588_p9 = pnand %p2587_p0, %p2581_p10 }
  0xd7   : > { %2591 = shalt.err (!%p2588_p9)
}
  0xd8   : > { %s2592_s12 = scalar_lea.vmem %s3150_s23, 128  ;;  %s2780_s15 = smov [#allocation4]  }
  0xd9   : > { %p2593_p5 = scmp.ne.s32.totalorder %s3150_s23, %s2592_s12  ;;  %s2597_s28 = sshll.u32 %s2780_s15, 4  ;;  %s2598_s28 = int_to_ptr.vmem [resolvable:$false] %s2597_s28 }
  0xda   : > { %s2599_s1 = scalar_lea.vmem %s2598_s28, 256  ;;  %p2600_p3 = scmp.lt.s32.totalorder %s3150_s23, %s2598_s28 }
  0xdb   : > { %p2595_p4 = pnand %p2593_p5, %p2579_p11  ;;  %p2601_p13 = scmp.lt.s32.totalorder %s2599_s1, %s2592_s12 }
  0xdd   : > { %p2596_p6 = pneg %p2595_p4  ;;  %p2602_p2 = por %p2601_p13, %p2600_p3 }
  0xdf   : > { %p2603_p1 = pnand %p2602_p2, %p2596_p6 }
  0xe1   : > { %2606 = shalt.err (!%p2603_p1)
}
  0xe2   : > { %2293 = dma.hbm_to_vmem [thread:$0]  (!%p3161_p8), %s3155_s13, 128, %s3150_s23, %s451_s6  }
  0xe3   : > { %s2607_s11 = scalar_lea.hbm %s3170_s22, 128  ;;  %p3531_p11 = pneg %p3019_p12 }
  0xe4   : > { %p2608_p9 = scmp.ne.s32.totalorder %s3170_s22, %s2607_s11  ;;  %s2612_s8 = scalar_lea.hbm %s3530_s9, 256 }
  0xe5   : > { %p2613_p3 = scmp.lt.u32.totalorder %s3170_s22, %s3530_s9  ;;  %p2614_p6 = scmp.lt.u32.totalorder %s2612_s8, %s2607_s11 }
  0xe6   : > { %p2610_p10 = pnand %p2608_p9, %p3531_p11  ;;  %p2616_p5 = scmp.lt.u32.totalorder %s2607_s11, %s3170_s22 }
  0xe7   : > { %p2615_p0 = por %p2614_p6, %p2613_p3 }
  0xe8   : > { %p2611_p7 = pneg %p2610_p10 }
  0xe9   : > { %p2617_p4 = por %p2616_p5, %p2615_p0 }
  0xeb   : > { %p2618_p13 = pnand %p2617_p4, %p2611_p7 }
  0xed   : > { %2621 = shalt.err (!%p2618_p13)
}
  0xee   : > { %s2622_s23 = scalar_lea.vmem %s3173_s14, 128  ;;  %p3532_p2 = pmov %p3531_p11 }
  0xef   : > { %p2623_p8 = scmp.ne.s32.totalorder %s3173_s14, %s2622_s23  ;;  %s2781_s13 = smov [#allocation9]  }
  0xf0   : > { %s2627_s6 = sshll.u32 %s2781_s13, 4  ;;  %s2628_s6 = int_to_ptr.vmem [resolvable:$false] %s2627_s6 }
  0xf1   : > { %p2625_p1 = pnand %p2623_p8, %p3532_p2  ;;  %s2629_s12 = scalar_lea.vmem %s2628_s6, 256 }
  0xf2   : > { %p2630_p11 = scmp.lt.s32.totalorder %s3173_s14, %s2628_s6  ;;  %p2631_p10 = scmp.lt.s32.totalorder %s2629_s12, %s2622_s23 }
  0xf3   : > { %p2626_p9 = pneg %p2625_p1 }
  0xf4   : > { %p2632_p3 = por %p2631_p10, %p2630_p11 }
  0xf6   : > { %p2633_p6 = pnand %p2632_p3, %p2626_p9 }
  0xf8   : > { %2636 = shalt.err (!%p2633_p6)
}
  0xf9   : > { %2299 = dma.hbm_to_vmem [thread:$0]  (!%p3019_p12), %s3170_s22, 128, %s3173_s14, %s3026_s4  }
  0xfa   : > { %s3533_s15 = sld [smem:[#allocation25_spill]] }
 0x100   : > { %p3534_p7 = scmp.ne.s32.totalorder %s3533_s15, 0 }
 0x101   : > { %s3227_s28 = sand.u32 (!%p3534_p7), 1, %s2747_s29   ;;  %p3535_p0 = scmp.ne.s32.totalorder (!%p3534_p7), %s3521_s25, 0 }
 0x102   : > { %508 = sbr.rel (%p3534_p7) target bundleno = 2943 (0xb7f), region = 72  ;;  %s2064_s1 = sshll.u32 (!%p3534_p7), %s3227_s28, 3 }
 0x103   : > { %s511_s11 = scalar_lea.sflag (!%p3534_p7), [#allocation5], %s3227_s28  ;;  %s3231_s21 = scalar_lea.vmem (!%p3534_p7), [#allocation4], %s2064_s1 }
 0x109   : > { %2710 = dma.done.wait (%p3535_p0), %s511_s11, 128  }
 0x10a   : > { %2712 = vsyncadd (%p3535_p0), %s511_s11, 4294967168  ;;  %s519_s2 = sand.u32 1, %s2918_s19   ;;  %s521_s4 = sand.u32 1, %s2735_s26  }
 0x10b   : > { %s3239_s22 = sshll.u32 %s521_s4, 3  ;;  %s520_s14 = scalar_lea.sflag [#allocation8], %s519_s2 }
 0x10c   : > { %s523_s3 = scalar_lea.vmem [#allocation7], %s3239_s22  ;;  %p3536_p12 = scmp.ne.s32.totalorder %s3508_s20, 0 }
 0x10e   : > { %2714 = dma.done.wait (%p3536_p12), %s520_s14, 256  }
 0x10f   : > { %2716 = vsyncadd (%p3536_p12), %s520_s14, 4294967040  ;;  %s532_s8 = scalar_lea.vmem [#allocation9], %s3239_s22  ;;  %p3537_p5 = scmp.eq.s32.totalorder %s2918_s19, 0 }
 0x111   : > { %2718 = dma.done.wait (%p3537_p5), [#allocation11], 1024   ;;  %p3538_p4 = pmov %p3537_p5 }
 0x113   : > { %2720 = vsyncadd (%p3538_p4), [#allocation11], 4294966272  ;;  %p3539_p13 = pmov %p3538_p4 }
 0x114   : > { %p3540_p8 = pmov %p3538_p4 }
 0x115   : > { %2722 = dma.done.wait (%p3539_p13), [#allocation14], 528  }
 0x116   : > { %2724 = vsyncadd (%p3540_p8), [#allocation14], 4294966768  ;;  %s3255_s25 = scalar_lea.vmem [#allocation16], %s2064_s1  ;;  %s3541_s5 = sld [smem:[#allocation23_spill]] }
 0x11c   : > { %p2072_p2 = scmp.ne.s32.totalorder %s3541_s5, 0 }
 0x11d   : > { %v606_v0 = vld [vmem:[#allocation12] sm:$0xff] (!%p2072_p2)  ;;  %v607_v1 = vld [vmem:[#allocation12 + $0x8] sm:$0xff] (!%p2072_p2)  ;;  %v2782_v3 = vmov (!%p2072_p2), 0.0|0.0   ;;  %v608_v6 = vld [vmem:[#allocation12 + $0x10] sm:$0xff] (!%p2072_p2)  ;;  %vm2783_vm0 = vmmov (!%p2072_p2), 0   ;;  %v2784_v11 = vmov (!%p2072_p2), 0.0  }
 0x11e   : > { %604 = sbr.rel (%p2072_p2) target bundleno = 511 (0x1ff), region = 104  ;;  %v692_v2 = vld [vmem:[#allocation13] sm:$0xff] (!%p2072_p2)  ;;  %2235 = vmatprep.subr.bf16.mxu0 (!%p2072_p2), %v2782_v3  ;;  %2241 = vmatprep.subr.bf16.mxu1 (!%p2072_p2), %v2782_v3  ;;  %v2236_v4 = vpack.c.bf16 (!%p2072_p2), %v607_v1, %v606_v0  ;;  %v693_v5 = vld [vmem:[#allocation13 + $0x8] sm:$0xff] (!%p2072_p2)  ;;  %v609_v7 = vld [vmem:[#allocation12 + $0x18] sm:$0xff] (!%p2072_p2)  ;;  %vm617_vm1 = vcmask (!%p2072_p2), 261120   ;;  %s3542_s24 = sld [smem:[#allocation35_spill]] (!%p2072_p2) }
 0x11f   : > { %v2242_v8 = vpack.c.bf16 (!%p2072_p2), %v693_v5, %v692_v2  ;;  %v694_v9 = vld [vmem:[#allocation13 + $0x10] sm:$0xff] (!%p2072_p2)  ;;  %v695_v10 = vld [vmem:[#allocation13 + $0x18] sm:$0xff] (!%p2072_p2)  ;;  %2150 = vmatprep.mubr.msk.f32.mxu0 (!%p2072_p2), %vm2783_vm0, %v2784_v11  ;;  %2161 = vmatprep.mubr.msk.f32.mxu1 (!%p2072_p2), %vm2783_vm0, %v2784_v11  ;;  %v2239_v12 = vpack.c.bf16 (!%p2072_p2), %v609_v7, %v608_v6  ;;  %v605_v14 = vld [vmem:[%s523_s3] sm:$0xff] (!%p2072_p2) }
 0x120   : > { %2237 = vmatpush3.bf16.msra.mxu0 (!%p2072_p2), %v2236_v4  ;;  %v2245_v13 = vpack.c.bf16 (!%p2072_p2), %v695_v10, %v694_v9  ;;  %v691_v15 = vld [vmem:[%s532_s8] sm:$0xff] (!%p2072_p2)  ;;  %v2075_v17 = vld [vmem:[#allocation15] ss:$0 sm:$0xff] (!%p2072_p2) }
 0x121   : > { %2243 = vmatpush3.bf16.msra.mxu1 (!%p2072_p2), %v2242_v8  ;;  %2238 = vmatprep.subr.bf16.mxu0 (!%p2072_p2), %v2782_v3 }
 0x122   : > { %2244 = vmatprep.subr.bf16.mxu1 (!%p2072_p2), %v2782_v3 }
 0x124   : > { %2240 = vmatpush3.bf16.msra.mxu0 (!%p2072_p2), %v2239_v12  ;;  %v2073_v16 = vld [vmem:[%s3542_s24] ss:$0 sm:$0xff] (!%p2072_p2) }
 0x125   : > { %2246 = vmatpush3.bf16.msra.mxu1 %v2245_v13 }
 0x127   : > { %2151 = vmatmul.mubr.msk.f32.vlgmr.msra.gmra.mrb[0].mxu0 %vm617_vm1, %v605_v14 }
 0x128   : > { %2162 = vmatmul.mubr.msk.f32.vlgmr.msra.gmra.mrb[0].mxu1 %vm617_vm1, %v691_v15 }
 0x1fa   : > { %v687_v18 = vpop.f32.mrb[0].mxu0 }
 0x1fb   : > { %v688_v19 = vadd.f32 %v2073_v16, %v687_v18  ;;  %v772_v20 = vpop.f32.mrb[0].mxu1  ;;  %v2152_v21 = vpop.f32.mrb[1].mxu0 }
 0x1fc   : > { %v773_v22 = vadd.f32 %v2075_v17, %v772_v20  ;;  %v2163_v23 = vpop.f32.mrb[1].mxu1 }
 0x1fd   : > { %776 = vst.msk [vmem:[#allocation2] sm:$0xff] %vm617_vm1, %v688_v19 }
 0x1fe   : > { %777 = vst.msk [vmem:[#allocation3] sm:$0xff] %vm617_vm1, %v773_v22 }
 0x1ff PF: > { %v779_v24 = vld [vmem:[#allocation10] sm:$0xff]  ;;  %v780_v25 = vld [vmem:[#allocation10 + $0x8] sm:$0xff]  ;;  %v781_v26 = vld [vmem:[#allocation10 + $0x10] sm:$0xff]  ;;  %v2785_v27 = vmov 0.0|0.0   ;;  %vm2786_vm2 = vmmov 0   ;;  %v2787_v30 = vmov 0.0  }
 0x200   : > { %2247 = vmatprep.subr.bf16.mxu0 %v2785_v27  ;;  %v2248_v28 = vpack.c.bf16 %v780_v25, %v779_v24  ;;  %v782_v29 = vld [vmem:[#allocation10 + $0x18] sm:$0xff]  ;;  %2172 = vmatprep.mubr.msk.f32.mxu0 %vm2786_vm2, %v2787_v30  ;;  %vm790_vm3 = vcmask 261120   ;;  %s2788_s23 = smov 120   ;;  %vm867_vm4 = vcmask 64512   ;;  %s3543_s12 = sld [smem:[#allocation33_spill]] }
 0x201   : > { %2175 = vmatprep.subr.mxu1 %v2787_v30  ;;  %2177 = vmatprep.mubr.msk.f32.mxu1 %vm2786_vm2, %v2787_v30  ;;  %v2251_v31 = vpack.c.bf16 %v782_v29, %v781_v26  ;;  %v3271_v32 = vld [vmem:[%s3231_s21] sm:$0xff]  ;;  %s2789_s15 = smov 112   ;;  %s2790_s1 = smov 104  }
 0x202   : > { %2249 = vmatpush3.bf16.msra.mxu0 %v2248_v28  ;;  %s3544_s2 = sld [smem:[#allocation38_spill]]  ;;  %s3545_s24 = sld [smem:[#allocation39_spill]] }
 0x203   : > { %2250 = vmatprep.subr.bf16.mxu0 %v2785_v27  ;;  %s3547_s13 = sld [smem:[#allocation23_spill]]  ;;  %s3549_s21 = sld [smem:[#allocation40_spill]] }
 0x204   : > { %v3278_v33 = vld [vmem:[#allocation2] sm:$0xff]  ;;  %s3550_s14 = sld [smem:[#allocation41_spill]]  ;;  %s1882_s8 = sshll.u32 %s3255_s25, 4  ;;  %s3385_s8 = int_to_ptr.vmem [resolvable:$true] %s1882_s8 }
 0x205   : > { %1032 = vrot.lane.b32.xlu0 %v3278_v33, %s2788_s23  ;;  %2176 = vmatpush3.xpose.msk.msra.mxu1 %vm867_vm4, %v3278_v33  ;;  %v3295_v41 = vld [vmem:[#allocation3] sm:$0xff]  ;;  %s3551_s20 = sld [smem:[#allocation42_spill]] }
 0x206   : > { %2252 = vmatpush3.bf16.msra.mxu0 %v2251_v31  ;;  %2180 = vmatprep.subr.mxu1 %v2787_v30  ;;  %v2077_v35 = vld [vmem:[%s3543_s12] ss:$0 sm:$0xff]  ;;  %s3548_s12 = sld [smem:[#allocation28_spill]] }
 0x207   : > { %2185 = vmatprep.subr.mxu0 %v2787_v30 }
 0x208   : > { %v1029_v57 = vld [vmem:[%s3544_s2] sm:$0xff]  ;;  %v1197_v60 = vld [vmem:[%s3544_s2 + $0x8] sm:$0xff]  ;;  %v1510_v25 = vld [vmem:[%s3544_s2 + $0x10] sm:$0xff] }
 0x209   : > { %2173 = vmatmul.mubr.msk.f32.vlgmr.msra.gmra.mrb[0].mxu0 %vm790_vm3, %v3271_v32 }
 0x20a   : > { %2187 = vmatprep.mubr.msk.f32.mxu0 %vm2786_vm2, %v2787_v30 }
 0x20c   : > { %p3552_p9 = scmp.ne.s32.totalorder %s3548_s12, 0 }
 0x277   : > { %v1033_v34 = vpop.permute.xlu0 %1032 }
 0x278   : > { %2186 = vmatpush3.xpose.msk.msra.mxu0 %vm867_vm4, %v1033_v34 }
 0x279   : > { %2195 = vmatprep.subr.mxu0 %v2787_v30 }
 0x2dc   : > { %v860_v36 = vpop.f32.mrb[0].mxu0 }
 0x2dd   : > { %v861_v37 = vadd.f32 %v2077_v35, %v860_v36  ;;  %v2174_v38 = vpop.f32.mrb[1].mxu0 }
 0x2df   : > { %v864_v39 = vmul.f32 0.35355338, %v861_v37 }
 0x2e1   : > { %1030 = vrot.lane.b32.xlu0 %v864_v39, %s2788_s23  ;;  %2178 = vmatmul.mubr.msk.f32.vlgmr.msra.gmra.mrb[0].mxu1 %vm867_vm4, %v864_v39 }
 0x2e2   : > { %2182 = vmatprep.mubr.msk.f32.mxu1 %vm2786_vm2, %v2787_v30  ;;  %2181 = vmatpush3.msra.mxu1 %v3295_v41 }
 0x2e3   : > { %2190 = vmatprep.subr.mxu1 %v2787_v30 }
 0x2e5   : > { %1118 = vrot.lane.b32.xlu0 %v3295_v41, %s2788_s23  ;;  %s3546_s23 = sld [smem:[#allocation24_spill]] }
 0x2e9   : > { %1346 = vrot.lane.b32.xlu0 %v3278_v33, %s2789_s15 }
 0x2eb   : > { %s2099_s6 = sshll.u32 %s3546_s23, 1  ;;  %s1867_s23 = scalar_lea.sflag [#allocation6], %s3227_s28 }
 0x353   : > { %v1031_v40 = vpop.permute.xlu0 %1030 }
 0x354   : > { %2188 = vmatmul.mubr.msk.f32.vlgmr.msra.gmra.mrb[2].mxu0 %vm867_vm4, %v1031_v40 }
 0x355   : > { %2197 = vmatprep.mubr.msk.f32.mxu0 %vm2786_vm2, %v2787_v30  ;;  %2196 = vmatpush3.msra.mxu0 %v1197_v60 }
 0x356   : > { %2205 = vmatprep.subr.mxu0 %v2787_v30 }
 0x357   : > { %v1119_v51 = vpop.permute.xlu0 %1118 }
 0x35b   : > { %v1347_v61 = vpop.permute.xlu0 %1346 }
 0x3b4   : > { %v940_v42 = vpop.f32.mrb[0].mxu1 }
 0x3b5   : > { %v2179_v43 = vpop.f32.mrb[1].mxu1  ;;  %v944_v44 = vsel %vm867_vm4, %v940_v42, -inf }
 0x3b6   : > { %945 = vmax.xlane.f32.xlu1 %v944_v44 }
 0x427   : > { %v1104_v45 = vpop.f32.mrb[2].mxu0 }
 0x428   : > { %v2189_v46 = vpop.f32.mrb[3].mxu0  ;;  %v1108_v47 = vsel %vm867_vm4, %v1104_v45, -inf }
 0x429   : > { %1109 = vmax.xlane.f32.xlu1 %v1108_v47 }
 0x443   : > { %v946_v48 = vpop.xlane.xlu1 %945 }
 0x444   : > { %v947_v49 = vsub.f32 %v940_v42, %v946_v48 }
 0x446   : > { %v948_v50 = vmul.f32 1.442695, %v947_v49 }
 0x448   : > { %2417 = vpow2.f32 %v948_v50 }
 0x452   : > { %v2418_v52 = vpop.eup %2417 }
 0x453   : > { %2183 = vmatmul.mubr.msk.f32.vlgmr.msra.gmra.mrb[2].mxu1 %vm867_vm4, %v2418_v52  ;;  %v950_v53 = vsel %vm867_vm4, %v2418_v52, 0.0 }
 0x454   : > { %951 = vadd.xlane.f32.xlu0 %v950_v53  ;;  %2191 = vmatpush3.msra.mxu1 %v1119_v51  ;;  %v2095_v51 = vld [vmem:[%s3545_s24] ss:$0 sm:$0xff] }
 0x455   : > { %2192 = vmatprep.mubr.msk.f32.mxu1 %vm2786_vm2, %v2787_v30  ;;  %2200 = vmatprep.subr.mxu1 %v2787_v30 }
 0x46a   : > { %1431 = vrot.lane.b32.xlu0 %v3295_v41, %s2789_s15 }
 0x46e   : > { %1585 = vrot.lane.b32.xlu0 %v864_v39, %s2790_s1 }
 0x4b6   : > { %v1110_v54 = vpop.xlane.xlu1 %1109 }
 0x4b7   : > { %v1111_v55 = vsub.f32 %v1104_v45, %v1110_v54 }
 0x4b9   : > { %v1112_v56 = vmul.f32 1.442695, %v1111_v55 }
 0x4bb   : > { %2419 = vpow2.f32 %v1112_v56 }
 0x4c5   : > { %v2420_v58 = vpop.eup %2419 }
 0x4c6   : > { %2193 = vmatmul.mubr.msk.f32.vlgmr.msra.gmra.mrb[4].mxu1 %vm867_vm4, %v2420_v58  ;;  %v1114_v59 = vsel %vm867_vm4, %v2420_v58, 0.0 }
 0x4c7   : > { %1115 = vadd.xlane.f32.xlu1 %v1114_v59  ;;  %2201 = vmatpush3.msra.mxu1 %v1029_v57 }
 0x4c8   : > { %2202 = vmatprep.mubr.msk.f32.mxu1 %vm2786_vm2, %v2787_v30  ;;  %2210 = vmatprep.subr.mxu1 %v2787_v30 }
 0x4d8   : > { %1344 = vrot.lane.b32.xlu1 %v864_v39, %s2789_s15  ;;  %s1878_s15 = sadd.s32 %s3547_s13, %s2099_s6  ;;  %s2637_s13 = scalar_lea.vmem %s3385_s8, 128 }
 0x4d9   : > { %s2100_s3 = sshll.u32 %s1878_s15, 7  ;;  %p2638_p1 = scmp.ne.s32.totalorder %s3385_s8, %s2637_s13 }
 0x4da   : > { %s3383_s24 = scalar_lea.hbm %s3551_s20, %s2100_s3  ;;  %s2791_s6 = smov [#allocation16]  }
 0x4db   : > { %p2639_p11 = pnand %p2638_p1, %p3552_p9  ;;  %s2641_s15 = sshll.u32 %s2791_s6, 4  ;;  %s2642_s15 = int_to_ptr.vmem [resolvable:$false] %s2641_s15 }
 0x4dc   : > { %p2644_p3 = scmp.lt.s32.totalorder %s3385_s8, %s2642_s15 }
 0x4dd   : > { %p2640_p10 = pneg %p2639_p11 }
 0x4e1   : > { %v952_v62 = vpop.xlane.xlu0 %951 }
 0x4e2   : > { %2421 = vrcp.f32 %v952_v62 }
 0x4e5   : > { %v1432_v3 = vpop.permute.xlu0 %1431 }
 0x4e9   : > { %v1586_v24 = vpop.permute.xlu0 %1585 }
 0x4ec   : > { %v2422_v63 = vpop.eup %2421 }
 0x526   : > { %v1022_v0 = vpop.f32.mrb[2].mxu1 }
 0x527   : > { %v1028_v1 = vmul.f32 %v2422_v63, %v1022_v0  ;;  %v2184_v2 = vpop.f32.mrb[3].mxu1 }
 0x529   : > { %2203 = vmatmul.mubr.msk.f32.vlgmr.msra.gmra.mrb[6].mxu1 %vm867_vm4, %v1028_v1  ;;  %v2096_v1 = vld [vmem:[%s3549_s21] ss:$0 sm:$0xff] }
 0x52a   : > { %2211 = vmatpush3.msra.mxu1 %v1432_v3  ;;  %2212 = vmatprep.mubr.msk.f32.mxu1 %vm2786_vm2, %v2787_v30  ;;  %v2097_v3 = vld [vmem:[%s3550_s14] ss:$0 sm:$0xff] }
 0x52b   : > { %2220 = vmatprep.subr.mxu1 %v2787_v30 }
 0x554   : > { %v1116_v4 = vpop.xlane.xlu1 %1115 }
 0x555   : > { %2423 = vrcp.f32 %v1116_v4 }
 0x558   : > { %v1345_v9 = vpop.permute.xlu1 %1344 }
 0x55f   : > { %v2424_v5 = vpop.eup %2423 }
 0x599   : > { %v1190_v6 = vpop.f32.mrb[4].mxu1 }
 0x59a   : > { %v1196_v7 = vmul.f32 %v2424_v5, %v1190_v6  ;;  %v2194_v8 = vpop.f32.mrb[5].mxu1 }
 0x59c   : > { %2198 = vmatmul.mubr.msk.f32.vlgmr.msra.gmra.mrb[4].mxu0 %vm867_vm4, %v1196_v7 }
 0x59d   : > { %2206 = vmatpush3.xpose.msk.msra.mxu0 %vm867_vm4, %v1347_v61  ;;  %2207 = vmatprep.mubr.msk.f32.mxu0 %vm2786_vm2, %v2787_v30 }
 0x59e   : > { %2215 = vmatprep.subr.mxu0 %v2787_v30 }
 0x5a0   : > { %2208 = vmatmul.mubr.msk.f32.vlgmr.msra.gmra.mrb[6].mxu0 %vm867_vm4, %v1345_v9 }
 0x5a1   : > { %2217 = vmatprep.mubr.msk.f32.mxu0 %vm2786_vm2, %v2787_v30  ;;  %2216 = vmatpush3.msra.mxu0 %v1510_v25 }
 0x5a2   : > { %2225 = vmatprep.subr.mxu0 %v2787_v30 }
 0x5fc   : > { %v1340_v10 = vpop.f32.mrb[6].mxu1 }
 0x5fd   : > { %v2204_v11 = vpop.f32.mrb[7].mxu1 }
 0x66f   : > { %v1267_v12 = vpop.f32.mrb[4].mxu0 }
 0x670   : > { %v1341_v13 = vadd.f32 %v1340_v10, %v1267_v12  ;;  %v2199_v14 = vpop.f32.mrb[5].mxu0 }
 0x673   : > { %v1418_v15 = vpop.f32.mrb[6].mxu0 }
 0x674   : > { %v2209_v16 = vpop.f32.mrb[7].mxu0  ;;  %v1422_v17 = vsel %vm867_vm4, %v1418_v15, -inf }
 0x675   : > { %1423 = vmax.xlane.f32.xlu1 %v1422_v17 }
 0x686   : > { %1587 = vrot.lane.b32.xlu1 %v3278_v33, %s2790_s1 }
 0x702   : > { %v1424_v18 = vpop.xlane.xlu1 %1423 }
 0x703   : > { %v1425_v19 = vsub.f32 %v1418_v15, %v1424_v18 }
 0x705   : > { %v1426_v20 = vmul.f32 1.442695, %v1425_v19 }
 0x706   : > { %v1588_v21 = vpop.permute.xlu1 %1587 }
 0x707   : > { %2425 = vpow2.f32 %v1426_v20 }
 0x711   : > { %v2426_v22 = vpop.eup %2425 }
 0x712   : > { %2213 = vmatmul.mubr.msk.f32.vlgmr.msra.gmra.mrb[8].mxu1 %vm867_vm4, %v2426_v22  ;;  %v1428_v23 = vsel %vm867_vm4, %v2426_v22, 0.0 }
 0x713   : > { %2221 = vmatpush3.xpose.msk.msra.mxu1 %vm867_vm4, %v1588_v21  ;;  %1429 = vadd.xlane.f32.xlu0 %v1428_v23 }
 0x714   : > { %2222 = vmatprep.mubr.msk.f32.mxu1 %vm2786_vm2, %v2787_v30  ;;  %2230 = vmatprep.subr.mxu1 %v2787_v30 }
 0x716   : > { %2223 = vmatmul.mubr.msk.f32.vlgmr.msra.gmra.mrb[10].mxu1 %vm867_vm4, %v1586_v24 }
 0x717   : > { %2232 = vmatprep.mubr.msk.f32.mxu1 %vm2786_vm2, %v2787_v30 }
 0x729   : > { %1672 = vrot.lane.b32.xlu0 %v3295_v41, %s2790_s1  ;;  %s2643_s1 = scalar_lea.vmem %s2642_s15, 256 }
 0x72a   : > { %p2645_p6 = scmp.lt.s32.totalorder %s2643_s1, %s2637_s13 }
 0x72c   : > { %p2646_p7 = por %p2645_p6, %p2644_p3 }
 0x72e   : > { %p2647_p0 = pnand %p2646_p7, %p2640_p10 }
 0x7a0   : > { %v1430_v26 = vpop.xlane.xlu0 %1429 }
 0x7a1   : > { %2427 = vrcp.f32 %v1430_v26 }
 0x7a4   : > { %v1673_v36 = vpop.permute.xlu0 %1672 }
 0x7ab   : > { %v2428_v27 = vpop.eup %2427 }
 0x7e5   : > { %v1503_v28 = vpop.f32.mrb[8].mxu1 }
 0x7e6   : > { %v1509_v29 = vmul.f32 %v2428_v27, %v1503_v28  ;;  %v2214_v31 = vpop.f32.mrb[9].mxu1 }
 0x7e8   : > { %2218 = vmatmul.mubr.msk.f32.vlgmr.msra.gmra.mrb[8].mxu0 %vm867_vm4, %v1509_v29 }
 0x7e9   : > { %v1659_v33 = vpop.f32.mrb[10].mxu1  ;;  %2227 = vmatprep.mubr.msk.f32.mxu0 %vm2786_vm2, %v2787_v30  ;;  %2226 = vmatpush3.msra.mxu0 %v1673_v36  ;;  %v1751_v30 = vld [vmem:[%s3544_s2 + $0x18] sm:$0xff] }
 0x7ea   : > { %v2224_v34 = vpop.f32.mrb[11].mxu1  ;;  %v1663_v35 = vsel %vm867_vm4, %v1659_v33, -inf  ;;  %2231 = vmatpush3.msra.mxu1 %v1751_v30 }
 0x7eb   : > { %1664 = vmax.xlane.f32.xlu1 %v1663_v35 }
 0x878   : > { %v1665_v37 = vpop.xlane.xlu1 %1664 }
 0x879   : > { %v1666_v38 = vsub.f32 %v1659_v33, %v1665_v37 }
 0x87b   : > { %v1667_v39 = vmul.f32 1.442695, %v1666_v38 }
 0x87d   : > { %2429 = vpow2.f32 %v1667_v39 }
 0x887   : > { %v2430_v40 = vpop.eup %2429 }
 0x888   : > { %2228 = vmatmul.mubr.msk.f32.vlgmr.msra.gmra.mrb[10].mxu0 %vm867_vm4, %v2430_v40  ;;  %v1669_v41 = vsel %vm867_vm4, %v2430_v40, 0.0 }
 0x889   : > { %1670 = vadd.xlane.f32.xlu1 %v1669_v41 }
 0x8bb   : > { %v1580_v42 = vpop.f32.mrb[8].mxu0 }
 0x8bc   : > { %v1584_v43 = vadd.f32 %v1580_v42, %v1341_v13  ;;  %v2219_v44 = vpop.f32.mrb[9].mxu0 }
 0x916   : > { %v1671_v45 = vpop.xlane.xlu1 %1670 }
 0x917   : > { %2431 = vrcp.f32 %v1671_v45 }
 0x921   : > { %v2432_v46 = vpop.eup %2431 }
 0x95b   : > { %v1744_v47 = vpop.f32.mrb[10].mxu0 }
 0x95c   : > { %v1750_v48 = vmul.f32 %v2432_v46, %v1744_v47  ;;  %v2229_v49 = vpop.f32.mrb[11].mxu0 }
 0x95e   : > { %2233 = vmatmul.mubr.msk.f32.vlgmr.msra.gmra.mrb[12].mxu1 %vm867_vm4, %v1750_v48 }
 0xa31   : > { %v1821_v50 = vpop.f32.mrb[12].mxu1 }
 0xa32   : > { %v1825_v52 = vadd.f32 %v1821_v50, %v1584_v43  ;;  %v2234_v53 = vpop.f32.mrb[13].mxu1 }
 0xa34   : > { %v1833_v54 = vadd.f32 %v2095_v51, %v1825_v52 }
 0xa36   : > { %v1834_v55 = vadd.f32 %v1833_v54, %v3271_v32 }
 0xa38   : > { %v1835_v56 = vsel %vm790_vm3, %v1834_v55, 0.0 }
 0xa39   : > { %1836 = vadd.xlane.f32.xlu1 %v1835_v56 }
 0xac6   : > { %v1837_v57 = vpop.xlane.xlu1 %1836 }
 0xac7   : > { %v1839_v58 = vmul.f32 0.03125, %v1837_v57 }
 0xac9   : > { %v1840_v59 = vsub.f32 %v1834_v55, %v1839_v58 }
 0xacb   : > { %v1841_v60 = vmul.f32 %v1840_v59, %v1840_v59 }
 0xacd   : > { %v1842_v61 = vsel %vm790_vm3, %v1841_v60, 0.0 }
 0xace   : > { %1843 = vadd.xlane.f32.xlu0 %v1842_v61 }
 0xb5b   : > { %v1844_v62 = vpop.xlane.xlu0 %1843 }
 0xb5c   : > { %v1845_v63 = vmul.f32 0.03125, %v1844_v62 }
 0xb5e   : > { %v1846_v0 = vadd.f32 1e-05, %v1845_v63 }
 0xb60   : > { %2433 = vrsqrt.f32 %v1846_v0 }
 0xb6a   : > { %v2434_v32 = vpop.eup %2433 }
 0xb6b   : > { %v1848_v2 = vmul.f32 %v2434_v32, %v1840_v59 }
 0xb6d   : > { %v1856_v4 = vmul.f32 %v2096_v1, %v1848_v2 }
 0xb6f   : > { %v1864_v5 = vadd.f32 %v2097_v3, %v1856_v4 }
 0xb71   : > { %1865 = vst.msk [vmem:[%s3255_s25] sm:$0xff] %vm790_vm3, %v1864_v5 }
 0xb72   : > { %2650 = shalt.err (!%p2647_p0)
}
 0xb73   : > { %s2651_s28 = scalar_lea.hbm %s3383_s24, 128  ;;  %s2655_s21 = scalar_lea.hbm %s3551_s20, 512 }
 0xb74   : > { %p2652_p12 = scmp.ne.s32.totalorder %s3383_s24, %s2651_s28  ;;  %p2656_p13 = scmp.lt.u32.totalorder %s3383_s24, %s3551_s20 }
 0xb75   : > { %p2657_p8 = scmp.lt.u32.totalorder %s2655_s21, %s2651_s28  ;;  %p2659_p1 = scmp.lt.u32.totalorder %s2651_s28, %s3383_s24 }
 0xb76   : > { %p2653_p5 = pnand %p2652_p12, %p3552_p9 }
 0xb77   : > { %p2658_p2 = por %p2657_p8, %p2656_p13 }
 0xb78   : > { %p2654_p4 = pneg %p2653_p5 }
 0xb79   : > { %p2660_p11 = por %p2659_p1, %p2658_p2 }
 0xb7b   : > { %p2661_p10 = pnand %p2660_p11, %p2654_p4 }
 0xb7d   : > { %2664 = shalt.err (!%p2661_p10)
}
 0xb7e   : > { %2275 = dma.vmem_to_hbm [thread:$0]  (%p3552_p9), %s3385_s8, 128, %s3383_s24, %s1867_s23  }
 0xb7f PF: > { %s3553_s14 = sld [smem:[#allocation22_spill]]  ;;  %s3554_s3 = sld [smem:[#allocation29_spill]] }
 0xb80   : > { %p2313_p3 = scmp.ge.s32.totalorder %s2771_s18, 2 }
 0xb85   : > { %s1894_s5 = sand.u32 1, %s3553_s14   ;;  %p3555_p6 = scmp.ne.s32.totalorder %s3554_s3, 0 }
 0xb86   : > { %s1895_s19 = scalar_lea.sflag [#allocation6], %s1894_s5 }
 0xb87   : > { %p2301_p7 = pnand %p2313_p3, %p3555_p6 }
 0xb89   : > { %2726 = dma.done.wait (!%p2301_p7), %s1895_s19, 128  }
 0xb8a   : > { %2728 = vsyncadd (!%p2301_p7), %s1895_s19, 4294967168  ;;  %s34_s18 = sadd.s32 1, %s2771_s18   ;;  %s3556_s12 = sld [smem:[#allocation26_spill]] }
 0xb8b   : > { %p31_p0 = scmp.ge.s32.totalorder %s34_s18, 6   ;;  %s3557_s8 = sld [smem:[#allocation27_spill]] }
 0xb8c   : > { %s3558_s25 = smov %s2735_s26  ;;  %s3559_s26 = smov %s2739_s27 }
 0xb8d   : > { %s3560_s27 = smov %s3143_s7  ;;  %s3561_s28 = smov %s2747_s29 }
 0xb8e   : > { %s3562_s29 = smov %s2751_s30  ;;  %s3563_s30 = smov %s3146_s10 }
 0xb8f   : > { %s3564_s14 = smov %s2763_s16  ;;  %s3565_s15 = smov %s2767_s17 }
 0xb90   : > { %s3566_s16 = smov %s3556_s12  ;;  %33 = sbr.rel (!%p31_p0) target bundleno = 27 (0x1b), region = 161 }
 0xb91   : > { %s3567_s17 = smov %s3557_s8 }
 0xb97   :  { %1900 = vsyncpa [#allocation5], 1 }
 0xb98   :  { %1902 = vsyncpa [#allocation5 + $0x1], 1 }
 0xb99   :  { %1903 = vsyncpa [#allocation8], 1 }
 0xb9a   :  { %1905 = vsyncpa [#allocation8 + $0x1], 1 }
 0xb9b   :  { %1906 = vsyncpa [#allocation11], 1 }
 0xb9c   :  { %1907 = vsyncpa [#allocation14], 1 }
 0xb9d   :  { %1908 = vsyncpa [#allocation6], 1 }
 0xb9e   :  { %1910 = vsyncpa [#allocation6 + $0x1], 1 }

</bundles_post_ra>
